<compile_context>
chip_gen: v7x
topology: tpu7x:2x2x1
jax: 0.10.0
libtpu: 0.0.40
codegen_flags: <defaults>
</compile_context>

<pallas_src>
import functools

import jax
import jax.numpy as jnp
from jax.experimental import pallas as pl
from jax.experimental.pallas import tpu as pltpu


# ----------------------------------------------------------------------------
# Pallas kernel: whole Bottle2neck forward for one batch element.
# ----------------------------------------------------------------------------
def bottle2neck_kernel(x_ref,
                       w1_ref, b1_ref, s1_ref, t1_ref,
                       wc_ref, bc_ref, sc_ref, tc_ref,
                       w3_ref, b3_ref, s3_ref, t3_ref,
                       wse1_ref, bse1_ref, sse_ref, tse_ref,
                       wse2_ref, bse2_ref,
                       o_ref,
                       sp_pad_ref,
                       *, width, scale, ksize, dilation, pad, t_real):
    f32 = jnp.float32
    bf16 = jnp.bfloat16
    nums = scale - 1

    x = x_ref[0]                                   # (C_in, T_pad)
    T = x.shape[1]
    planes = b3_ref.shape[0]

    # mask for the zero-padded time columns (only materialized if needed)
    if t_real != T:
        mask = jax.lax.broadcasted_iota(jnp.int32, (1, T), 1) < t_real
    else:
        mask = None

    def mask_cols(a):
        return a if mask is None else jnp.where(mask, a, 0.0)

    # ---- conv1 (1x1) -> relu -> bn1 (folded affine) ----
    out = jnp.dot(w1_ref[...], x.astype(bf16),
                  preferred_element_type=f32) + b1_ref[...]
    out = jnp.maximum(out, 0.0)
    out = out * s1_ref[...] + t1_ref[...]          # (width*scale, T)
    out = mask_cols(out)                           # padded cols must be exactly 0

    # ---- zero the halo columns of the conv scratch (cheap; done every grid
    # step so it is megacore-safe — the middle region is rewritten per branch)
    if pad > 0:
        zeros_edge = jnp.zeros((width, pad), bf16)
        sp_pad_ref[:, pl.ds(0, pad)] = zeros_edge
        sp_pad_ref[:, pl.ds(T + pad, pad)] = zeros_edge

    # ---- Res2Net branch chain, conv3 accumulated incrementally ----
    out3 = jnp.zeros((planes, T), f32)
    sp = None
    for i in range(nums):
        chunk = out[i * width:(i + 1) * width, :]
        sp_in = chunk if i == 0 else sp + chunk

        if ksize > 1:
            # write the branch input into the middle of the padded scratch,
            # then stack the k dilated-shifted views into one fat RHS
            sp_pad_ref[:, pl.ds(pad, T)] = sp_in.astype(bf16)
            rhs = jnp.concatenate(
                [sp_pad_ref[:, pl.ds(j * dilation, T)] for j in range(ksize)],
                axis=0)                            # (k*width, T) bf16
        else:
            rhs = sp_in.astype(bf16)

        acc = jnp.dot(wc_ref[i], rhs, preferred_element_type=f32) + bc_ref[i]
        acc = jnp.maximum(acc, 0.0)                # relu
        sp = acc * sc_ref[i] + tc_ref[i]           # bn_i (folded)
        sp = mask_cols(sp)                         # keep padded cols zero

        # fold this branch straight into conv3 (no big concatenate)
        out3 = out3 + jnp.dot(w3_ref[:, i * width:(i + 1) * width],
                              sp.astype(bf16), preferred_element_type=f32)

    # untouched last chunk
    last = out[nums * width:scale * width, :]
    out3 = out3 + jnp.dot(w3_ref[:, nums * width:scale * width],
                          last.astype(bf16), preferred_element_type=f32)

    # conv3 bias -> relu -> bn3
    out3 = out3 + b3_ref[...]
    out3 = jnp.maximum(out3, 0.0)
    out3 = out3 * s3_ref[...] + t3_ref[...]        # (planes, T)
    out3 = mask_cols(out3)

    # ---- SE module: mean over (real) time -> 1x1 -> relu -> bn -> 1x1 ->
    # sigmoid -> channel gate ----
    s = jnp.sum(out3, axis=1, keepdims=True) * (1.0 / t_real)   # (planes, 1)
    h = jnp.dot(wse1_ref[...], s.astype(bf16),
                preferred_element_type=f32) + bse1_ref[...]
    h = jnp.maximum(h, 0.0)
    h = h * sse_ref[...] + tse_ref[...]
    g = jnp.dot(wse2_ref[...], h.astype(bf16),
                preferred_element_type=f32) + bse2_ref[...]
    g = jax.nn.sigmoid(g)                          # (planes, 1)
    out_se = out3 * g

    # residual add
    o_ref[0] = (out_se + x.astype(f32)).astype(o_ref.dtype)


# ----------------------------------------------------------------------------
# Wrapper: weight fusing / casting, T padding, pallas_call plumbing.
# ----------------------------------------------------------------------------
def bottle2neck_pallas(x, params, *, width, scale, ksize, dilation):
    B, C, T = x.shape
    planes = params["w3"].shape[0]
    assert C == planes, "residual add requires inplanes == planes"
    assert params["w1"].shape[1] == C
    pad = (ksize // 2) * dilation
    nums = scale - 1
    bf16 = jnp.bfloat16

    # pad time to a lane multiple so all stores are lane-dense
    T_pad = ((T + 127) // 128) * 128
    x_in = jnp.pad(x, ((0, 0), (0, 0), (0, T_pad - T))) if T_pad != T else x

    # fuse the k conv taps per branch into one (width, k*width) weight
    wc_fat = params["wc"].transpose(0, 2, 1, 3).reshape(nums, width, ksize * width)

    weights = [
        params["w1"].astype(bf16), params["b1"], params["s1"], params["t1"],
        wc_fat.astype(bf16), params["bc"], params["sc"], params["tc"],
        params["w3"].astype(bf16), params["b3"], params["s3"], params["t3"],
        params["wse1"].astype(bf16), params["bse1"], params["sse"], params["tse"],
        params["wse2"].astype(bf16), params["bse2"],
    ]

    kernel = functools.partial(bottle2neck_kernel,
                               width=width, scale=scale, ksize=ksize,
                               dilation=dilation, pad=pad, t_real=T)

    def _const_spec(shape):
        return pl.BlockSpec(shape, lambda b, s=shape: (0,) * len(s))

    in_specs = [pl.BlockSpec((1, C, T_pad), lambda b: (b, 0, 0))]
    in_specs += [_const_spec(w.shape) for w in weights]

    out = pl.pallas_call(
        kernel,
        out_shape=jax.ShapeDtypeStruct((B, planes, T_pad), x.dtype),
        grid=(B,),
        in_specs=in_specs,
        out_specs=pl.BlockSpec((1, planes, T_pad), lambda b: (b, 0, 0)),
        scratch_shapes=[pltpu.VMEM((width, T_pad + 2 * pad), jnp.bfloat16)],
        compiler_params=pltpu.CompilerParams(
            dimension_semantics=("parallel",),
            vmem_limit_bytes=64 * 1024 * 1024),
    )(x_in, *weights)

    return out[:, :, :T] if T_pad != T else out


# ----------------------------------------------------------------------------
# Pure-JAX reference (mirrors the PyTorch forward, inference-mode BN,
# with the same bf16-operand / f32-accumulate matmuls as the kernel).
# ----------------------------------------------------------------------------
def bottle2neck_ref(x, p, *, width, scale, ksize, dilation):
    bf16, f32 = jnp.bfloat16, jnp.float32

    def mm(w, a):
        return jnp.einsum("oc,bct->bot", w.astype(bf16), a.astype(bf16),
                          preferred_element_type=f32)

    pad = (ksize // 2) * dilation
    T = x.shape[2]
    nums = scale - 1

    out = mm(p["w1"], x) + p["b1"][None]
    out = jnp.maximum(out, 0.0) * p["s1"][None] + p["t1"][None]

    out_list = []
    sp = None
    for i in range(nums):
        chunk = out[:, i * width:(i + 1) * width, :]
        sp = chunk if i == 0 else sp + chunk
        sp_pad = jnp.pad(sp, ((0, 0), (0, 0), (pad, pad)))
        acc = jnp.zeros_like(sp)
        for j in range(ksize):
            acc = acc + mm(p["wc"][i, j],
                           sp_pad[:, :, j * dilation:j * dilation + T])
        acc = acc + p["bc"][i][None]
        sp = jnp.maximum(acc, 0.0) * p["sc"][i][None] + p["tc"][i][None]
        out_list.append(sp)
    out_list.append(out[:, nums * width:scale * width, :])
    cat = jnp.concatenate(out_list, axis=1)

    out3 = mm(p["w3"], cat) + p["b3"][None]
    out3 = jnp.maximum(out3, 0.0) * p["s3"][None] + p["t3"][None]

    s = jnp.mean(out3, axis=2, keepdims=True)
    h = mm(p["wse1"], s) + p["bse1"][None]
    h = jnp.maximum(h, 0.0) * p["sse"][None] + p["tse"][None]
    g = jax.nn.sigmoid(mm(p["wse2"], h) + p["bse2"][None])
    return out3 * g + x


# ----------------------------------------------------------------------------
# Deterministic parameter construction (shapes from Bottle2neck.__init__).
# ----------------------------------------------------------------------------
def make_params(key, inplanes, planes, ksize, scale, bottleneck=128):
    width = planes // scale
    ws = width * scale
    nums = scale - 1
    eps = 1e-5

    keys = jax.random.split(key, 16)

    def bn_fold(kg, kb, c):
        gamma = 1.0 + 0.1 * jax.random.normal(kg, (c,), jnp.float32)
        beta = 0.1 * jax.random.normal(kb, (c,), jnp.float32)
        mean = jnp.zeros((c,), jnp.float32)
        var = jnp.ones((c,), jnp.float32)
        s = gamma / jnp.sqrt(var + eps)
        t = beta - mean * s
        return s.reshape(c, 1), t.reshape(c, 1)

    s1, t1 = bn_fold(keys[0], keys[1], ws)
    s3, t3 = bn_fold(keys[2], keys[3], planes)
    sse, tse = bn_fold(keys[4], keys[5], bottleneck)
    scb, tcb = bn_fold(keys[6], keys[7], nums * width)

    return dict(
        w1=0.2 * jax.random.normal(keys[8], (ws, inplanes), jnp.float32),
        b1=0.05 * jax.random.normal(keys[9], (ws, 1), jnp.float32),
        s1=s1, t1=t1,
        wc=0.2 * jax.random.normal(keys[10], (nums, ksize, width, width), jnp.float32),
        bc=0.05 * jax.random.normal(keys[11], (nums, width, 1), jnp.float32),
        sc=scb.reshape(nums, width, 1), tc=tcb.reshape(nums, width, 1),
        w3=0.2 * jax.random.normal(keys[12], (planes, ws), jnp.float32),
        b3=0.05 * jax.random.normal(keys[13], (planes, 1), jnp.float32),
        s3=s3, t3=t3,
        wse1=0.2 * jax.random.normal(keys[14], (bottleneck, planes), jnp.float32),
        bse1=jnp.zeros((bottleneck, 1), jnp.float32),
        sse=sse, tse=tse,
        wse2=0.2 * jax.random.normal(keys[15], (planes, bottleneck), jnp.float32),
        bse2=jnp.zeros((planes, 1), jnp.float32),
    )


if __name__ == "__main__":
    # Small shapes consistent with the module (residual requires
    # inplanes == planes).  T=96 exercises the pad-to-128 + masking path.
    B, inplanes, planes, T = 2, 32, 32, 96
    scale, ksize, dilation = 4, 3, 2
    bottleneck = 32
    width = planes // scale

    key = jax.random.PRNGKey(0)
    kx, kp = jax.random.split(key)
    x = jax.random.normal(kx, (B, inplanes, T), jnp.float32)
    params = make_params(kp, inplanes, planes, ksize, scale, bottleneck=bottleneck)

    out = bottle2neck_pallas(x, params, width=width, scale=scale,
                             ksize=ksize, dilation=dilation)
    out = jax.block_until_ready(out)

    ref = bottle2neck_ref(x, params, width=width, scale=scale,
                          ksize=ksize, dilation=dilation)
    assert out.shape == (B, planes, T)
    max_err = float(jnp.max(jnp.abs(out - ref)))
    assert jnp.allclose(out, ref, atol=1e-2, rtol=1e-2), \
        f"mismatch vs reference (max abs err {max_err})"

    print("KERNEL_OK")
</pallas_src>

<mosaic_0001>
module attributes {stable_mosaic.version = 11 : i64} {
  func.func @bottle2neck_kernel(%arg0: i32, %arg1: memref<1x32x128xf32, #tpu.memory_space<vmem>>, %arg2: memref<32x32xbf16, #tpu.memory_space<vmem>>, %arg3: memref<32x1xf32, #tpu.memory_space<vmem>>, %arg4: memref<32x1xf32, #tpu.memory_space<vmem>>, %arg5: memref<32x1xf32, #tpu.memory_space<vmem>>, %arg6: memref<3x8x24xbf16, #tpu.memory_space<vmem>>, %arg7: memref<3x8x1xf32, #tpu.memory_space<vmem>>, %arg8: memref<3x8x1xf32, #tpu.memory_space<vmem>>, %arg9: memref<3x8x1xf32, #tpu.memory_space<vmem>>, %arg10: memref<32x32xbf16, #tpu.memory_space<vmem>>, %arg11: memref<32x1xf32, #tpu.memory_space<vmem>>, %arg12: memref<32x1xf32, #tpu.memory_space<vmem>>, %arg13: memref<32x1xf32, #tpu.memory_space<vmem>>, %arg14: memref<32x32xbf16, #tpu.memory_space<vmem>>, %arg15: memref<32x1xf32, #tpu.memory_space<vmem>>, %arg16: memref<32x1xf32, #tpu.memory_space<vmem>>, %arg17: memref<32x1xf32, #tpu.memory_space<vmem>>, %arg18: memref<32x32xbf16, #tpu.memory_space<vmem>>, %arg19: memref<32x1xf32, #tpu.memory_space<vmem>>, %arg20: memref<1x32x128xf32, #tpu.memory_space<vmem>>, %arg21: memref<8x132xbf16, #tpu.memory_space<vmem>>) attributes {dimension_semantics = [#tpu.dimension_semantics<parallel>], iteration_bounds = array<i64: 2>, scalar_prefetch = 0 : i64, scratch_operands = 1 : i64, tpu.core_type = #tpu.core_type<tc>, window_params = [{transform_indices = @transform_0, window_bounds = array<i64: 1, 32, 128>}, {pipeline_mode = #tpu.pipeline_mode<synchronous>, transform_indices = @transform_1, window_bounds = array<i64: 32, 32>}, {pipeline_mode = #tpu.pipeline_mode<synchronous>, transform_indices = @transform_2, window_bounds = array<i64: 32, 1>}, {pipeline_mode = #tpu.pipeline_mode<synchronous>, transform_indices = @transform_3, window_bounds = array<i64: 32, 1>}, {pipeline_mode = #tpu.pipeline_mode<synchronous>, transform_indices = @transform_4, window_bounds = array<i64: 32, 1>}, {pipeline_mode = #tpu.pipeline_mode<synchronous>, transform_indices = @transform_5, window_bounds = array<i64: 3, 8, 24>}, {pipeline_mode = #tpu.pipeline_mode<synchronous>, transform_indices = @transform_6, window_bounds = array<i64: 3, 8, 1>}, {pipeline_mode = #tpu.pipeline_mode<synchronous>, transform_indices = @transform_7, window_bounds = array<i64: 3, 8, 1>}, {pipeline_mode = #tpu.pipeline_mode<synchronous>, transform_indices = @transform_8, window_bounds = array<i64: 3, 8, 1>}, {pipeline_mode = #tpu.pipeline_mode<synchronous>, transform_indices = @transform_9, window_bounds = array<i64: 32, 32>}, {pipeline_mode = #tpu.pipeline_mode<synchronous>, transform_indices = @transform_10, window_bounds = array<i64: 32, 1>}, {pipeline_mode = #tpu.pipeline_mode<synchronous>, transform_indices = @transform_11, window_bounds = array<i64: 32, 1>}, {pipeline_mode = #tpu.pipeline_mode<synchronous>, transform_indices = @transform_12, window_bounds = array<i64: 32, 1>}, {pipeline_mode = #tpu.pipeline_mode<synchronous>, transform_indices = @transform_13, window_bounds = array<i64: 32, 32>}, {pipeline_mode = #tpu.pipeline_mode<synchronous>, transform_indices = @transform_14, window_bounds = array<i64: 32, 1>}, {pipeline_mode = #tpu.pipeline_mode<synchronous>, transform_indices = @transform_15, window_bounds = array<i64: 32, 1>}, {pipeline_mode = #tpu.pipeline_mode<synchronous>, transform_indices = @transform_16, window_bounds = array<i64: 32, 1>}, {pipeline_mode = #tpu.pipeline_mode<synchronous>, transform_indices = @transform_17, window_bounds = array<i64: 32, 32>}, {pipeline_mode = #tpu.pipeline_mode<synchronous>, transform_indices = @transform_18, window_bounds = array<i64: 32, 1>}, {transform_indices = @transform_19, window_bounds = array<i64: 1, 32, 128>}]} {
    %c0 = arith.constant 0 : index
    %c0_0 = arith.constant 0 : index
    %c0_1 = arith.constant 0 : index
    %0 = vector.load %arg1[%c0, %c0_0, %c0_1] : memref<1x32x128xf32, #tpu.memory_space<vmem>>, vector<1x32x128xf32>
    %1 = vector.shape_cast %0 : vector<1x32x128xf32> to vector<32x128xf32>
    %2 = tpu.iota {dimensions = array<i32: 1>} : vector<1x128xi32>
    %c96_i32 = arith.constant 96 : i32
    %3 = vector.broadcast %c96_i32 : i32 to vector<1x128xi32>
    %4 = arith.cmpi slt, %2, %3 : vector<1x128xi32>
    %c0_2 = arith.constant 0 : index
    %c0_3 = arith.constant 0 : index
    %5 = vector.load %arg2[%c0_2, %c0_3] : memref<32x32xbf16, #tpu.memory_space<vmem>>, vector<32x32xbf16>
    %6 = arith.truncf %1 : vector<32x128xf32> to vector<32x128xbf16>
    %cst = arith.constant dense<0.000000e+00> : vector<32x128xf32>
    %7 = tpu.matmul %5, %6, %cst {dimension_numbers = #tpu.dot_dimension_numbers<[1], [0], [0], [1], [0, 0, 1, 1], [], []>} : vector<32x32xbf16>, vector<32x128xbf16>, vector<32x128xf32> -> vector<32x128xf32>
    %c0_4 = arith.constant 0 : index
    %c0_5 = arith.constant 0 : index
    %8 = vector.load %arg3[%c0_4, %c0_5] : memref<32x1xf32, #tpu.memory_space<vmem>>, vector<32x1xf32>
    %9 = vector.broadcast %8 : vector<32x1xf32> to vector<32x128xf32>
    %10 = arith.addf %7, %9 : vector<32x128xf32>
    %cst_6 = arith.constant 0.000000e+00 : f32
    %11 = vector.broadcast %cst_6 : f32 to vector<32x128xf32>
    %12 = arith.maximumf %10, %11 : vector<32x128xf32>
    %c0_7 = arith.constant 0 : index
    %c0_8 = arith.constant 0 : index
    %13 = vector.load %arg4[%c0_7, %c0_8] : memref<32x1xf32, #tpu.memory_space<vmem>>, vector<32x1xf32>
    %14 = vector.broadcast %13 : vector<32x1xf32> to vector<32x128xf32>
    %15 = arith.mulf %12, %14 : vector<32x128xf32>
    %c0_9 = arith.constant 0 : index
    %c0_10 = arith.constant 0 : index
    %16 = vector.load %arg5[%c0_9, %c0_10] : memref<32x1xf32, #tpu.memory_space<vmem>>, vector<32x1xf32>
    %17 = vector.broadcast %16 : vector<32x1xf32> to vector<32x128xf32>
    %18 = arith.addf %15, %17 : vector<32x128xf32>
    %cst_11 = arith.constant 0.000000e+00 : f32
    %19 = vector.shape_cast %4 : vector<1x128xi1> to vector<1x128xi1>
    %20 = vector.broadcast %19 : vector<1x128xi1> to vector<32x128xi1>
    %21 = vector.broadcast %cst_11 : f32 to vector<32x128xf32>
    %22 = arith.select %20, %18, %21 : vector<32x128xi1>, vector<32x128xf32>
    %cst_12 = arith.constant 0.000000e+00 : bf16
    %23 = vector.broadcast %cst_12 : bf16 to vector<8x2xbf16>
    %c0_13 = arith.constant 0 : index
    %c0_14 = arith.constant 0 : index
    %24 = vector.load %arg21[%c0_13, %c0_14] : memref<8x132xbf16, #tpu.memory_space<vmem>>, vector<8x2xbf16>
    tpu.vector_store %arg21[%c0_13, %c0_14], %23 {strides = array<i32>} : memref<8x132xbf16, #tpu.memory_space<vmem>>, vector<8x2xbf16>,
    %c0_15 = arith.constant 0 : index
    %c130 = arith.constant 130 : index
    %25 = vector.load %arg21[%c0_15, %c130] : memref<8x132xbf16, #tpu.memory_space<vmem>>, vector<8x2xbf16>
    tpu.vector_store %arg21[%c0_15, %c130], %23 {strides = array<i32>} : memref<8x132xbf16, #tpu.memory_space<vmem>>, vector<8x2xbf16>,
    %cst_16 = arith.constant 0.000000e+00 : f32
    %26 = vector.broadcast %cst_16 : f32 to vector<32x128xf32>
    %27 = vector.extract_strided_slice %22 {offsets = [0, 0], sizes = [8, 128], strides = [1, 1]} : vector<32x128xf32> to vector<8x128xf32>
    %28 = arith.truncf %27 : vector<8x128xf32> to vector<8x128xbf16>
    %c0_17 = arith.constant 0 : index
    %c2 = arith.constant 2 : index
    %29 = vector.load %arg21[%c0_17, %c2] : memref<8x132xbf16, #tpu.memory_space<vmem>>, vector<8x128xbf16>
    tpu.vector_store %arg21[%c0_17, %c2], %28 {strides = array<i32>} : memref<8x132xbf16, #tpu.memory_space<vmem>>, vector<8x128xbf16>,
    %c0_18 = arith.constant 0 : index
    %c0_19 = arith.constant 0 : index
    %30 = vector.load %arg21[%c0_18, %c0_19] : memref<8x132xbf16, #tpu.memory_space<vmem>>, vector<8x128xbf16>
    %c0_20 = arith.constant 0 : index
    %c2_21 = arith.constant 2 : index
    %31 = vector.load %arg21[%c0_20, %c2_21] : memref<8x132xbf16, #tpu.memory_space<vmem>>, vector<8x128xbf16>
    %c0_22 = arith.constant 0 : index
    %c4 = arith.constant 4 : index
    %32 = vector.load %arg21[%c0_22, %c4] : memref<8x132xbf16, #tpu.memory_space<vmem>>, vector<8x128xbf16>
    %33 = tpu.concatenate %30, %31, %32 in 0 : vector<8x128xbf16>, vector<8x128xbf16>, vector<8x128xbf16> -> vector<24x128xbf16>
    %c0_23 = arith.constant 0 : index
    %c0_24 = arith.constant 0 : index
    %c0_25 = arith.constant 0 : index
    %34 = vector.load %arg6[%c0_23, %c0_24, %c0_25] : memref<3x8x24xbf16, #tpu.memory_space<vmem>>, vector<1x8x24xbf16>
    %35 = vector.shape_cast %34 : vector<1x8x24xbf16> to vector<8x24xbf16>
    %cst_26 = arith.constant dense<0.000000e+00> : vector<8x128xf32>
    %36 = tpu.matmul %35, %33, %cst_26 {dimension_numbers = #tpu.dot_dimension_numbers<[1], [0], [0], [1], [0, 0, 1, 1], [], []>} : vector<8x24xbf16>, vector<24x128xbf16>, vector<8x128xf32> -> vector<8x128xf32>
    %c0_27 = arith.constant 0 : index
    %c0_28 = arith.constant 0 : index
    %c0_29 = arith.constant 0 : index
    %37 = vector.load %arg7[%c0_27, %c0_28, %c0_29] : memref<3x8x1xf32, #tpu.memory_space<vmem>>, vector<1x8x1xf32>
    %38 = vector.shape_cast %37 : vector<1x8x1xf32> to vector<8x1xf32>
    %39 = vector.broadcast %38 : vector<8x1xf32> to vector<8x128xf32>
    %40 = arith.addf %36, %39 : vector<8x128xf32>
    %cst_30 = arith.constant 0.000000e+00 : f32
    %41 = vector.broadcast %cst_30 : f32 to vector<8x128xf32>
    %42 = arith.maximumf %40, %41 : vector<8x128xf32>
    %c0_31 = arith.constant 0 : index
    %c0_32 = arith.constant 0 : index
    %c0_33 = arith.constant 0 : index
    %43 = vector.load %arg8[%c0_31, %c0_32, %c0_33] : memref<3x8x1xf32, #tpu.memory_space<vmem>>, vector<1x8x1xf32>
    %44 = vector.shape_cast %43 : vector<1x8x1xf32> to vector<8x1xf32>
    %45 = vector.broadcast %44 : vector<8x1xf32> to vector<8x128xf32>
    %46 = arith.mulf %42, %45 : vector<8x128xf32>
    %c0_34 = arith.constant 0 : index
    %c0_35 = arith.constant 0 : index
    %c0_36 = arith.constant 0 : index
    %47 = vector.load %arg9[%c0_34, %c0_35, %c0_36] : memref<3x8x1xf32, #tpu.memory_space<vmem>>, vector<1x8x1xf32>
    %48 = vector.shape_cast %47 : vector<1x8x1xf32> to vector<8x1xf32>
    %49 = vector.broadcast %48 : vector<8x1xf32> to vector<8x128xf32>
    %50 = arith.addf %46, %49 : vector<8x128xf32>
    %cst_37 = arith.constant 0.000000e+00 : f32
    %51 = vector.shape_cast %4 : vector<1x128xi1> to vector<1x128xi1>
    %52 = vector.broadcast %51 : vector<1x128xi1> to vector<8x128xi1>
    %53 = vector.broadcast %cst_37 : f32 to vector<8x128xf32>
    %54 = arith.select %52, %50, %53 : vector<8x128xi1>, vector<8x128xf32>
    %c0_38 = arith.constant 0 : index
    %c0_39 = arith.constant 0 : index
    %55 = vector.load %arg10[%c0_38, %c0_39] : memref<32x32xbf16, #tpu.memory_space<vmem>>, vector<32x8xbf16>
    %56 = arith.truncf %54 : vector<8x128xf32> to vector<8x128xbf16>
    %cst_40 = arith.constant dense<0.000000e+00> : vector<32x128xf32>
    %57 = tpu.matmul %55, %56, %cst_40 {dimension_numbers = #tpu.dot_dimension_numbers<[1], [0], [0], [1], [0, 0, 1, 1], [], []>} : vector<32x8xbf16>, vector<8x128xbf16>, vector<32x128xf32> -> vector<32x128xf32>
    %58 = arith.addf %26, %57 : vector<32x128xf32>
    %59 = vector.extract_strided_slice %22 {offsets = [8, 0], sizes = [8, 128], strides = [1, 1]} : vector<32x128xf32> to vector<8x128xf32>
    %60 = arith.addf %54, %59 : vector<8x128xf32>
    %61 = arith.truncf %60 : vector<8x128xf32> to vector<8x128xbf16>
    %c0_41 = arith.constant 0 : index
    %c2_42 = arith.constant 2 : index
    %62 = vector.load %arg21[%c0_41, %c2_42] : memref<8x132xbf16, #tpu.memory_space<vmem>>, vector<8x128xbf16>
    tpu.vector_store %arg21[%c0_41, %c2_42], %61 {strides = array<i32>} : memref<8x132xbf16, #tpu.memory_space<vmem>>, vector<8x128xbf16>,
    %c0_43 = arith.constant 0 : index
    %c0_44 = arith.constant 0 : index
    %63 = vector.load %arg21[%c0_43, %c0_44] : memref<8x132xbf16, #tpu.memory_space<vmem>>, vector<8x128xbf16>
    %c0_45 = arith.constant 0 : index
    %c2_46 = arith.constant 2 : index
    %64 = vector.load %arg21[%c0_45, %c2_46] : memref<8x132xbf16, #tpu.memory_space<vmem>>, vector<8x128xbf16>
    %c0_47 = arith.constant 0 : index
    %c4_48 = arith.constant 4 : index
    %65 = vector.load %arg21[%c0_47, %c4_48] : memref<8x132xbf16, #tpu.memory_space<vmem>>, vector<8x128xbf16>
    %66 = tpu.concatenate %63, %64, %65 in 0 : vector<8x128xbf16>, vector<8x128xbf16>, vector<8x128xbf16> -> vector<24x128xbf16>
    %c1 = arith.constant 1 : index
    %c0_49 = arith.constant 0 : index
    %c0_50 = arith.constant 0 : index
    %67 = vector.load %arg6[%c1, %c0_49, %c0_50] : memref<3x8x24xbf16, #tpu.memory_space<vmem>>, vector<1x8x24xbf16>
    %68 = vector.shape_cast %67 : vector<1x8x24xbf16> to vector<8x24xbf16>
    %cst_51 = arith.constant dense<0.000000e+00> : vector<8x128xf32>
    %69 = tpu.matmul %68, %66, %cst_51 {dimension_numbers = #tpu.dot_dimension_numbers<[1], [0], [0], [1], [0, 0, 1, 1], [], []>} : vector<8x24xbf16>, vector<24x128xbf16>, vector<8x128xf32> -> vector<8x128xf32>
    %c1_52 = arith.constant 1 : index
    %c0_53 = arith.constant 0 : index
    %c0_54 = arith.constant 0 : index
    %70 = vector.load %arg7[%c1_52, %c0_53, %c0_54] : memref<3x8x1xf32, #tpu.memory_space<vmem>>, vector<1x8x1xf32>
    %71 = vector.shape_cast %70 : vector<1x8x1xf32> to vector<8x1xf32>
    %72 = vector.broadcast %71 : vector<8x1xf32> to vector<8x128xf32>
    %73 = arith.addf %69, %72 : vector<8x128xf32>
    %cst_55 = arith.constant 0.000000e+00 : f32
    %74 = vector.broadcast %cst_55 : f32 to vector<8x128xf32>
    %75 = arith.maximumf %73, %74 : vector<8x128xf32>
    %c1_56 = arith.constant 1 : index
    %c0_57 = arith.constant 0 : index
    %c0_58 = arith.constant 0 : index
    %76 = vector.load %arg8[%c1_56, %c0_57, %c0_58] : memref<3x8x1xf32, #tpu.memory_space<vmem>>, vector<1x8x1xf32>
    %77 = vector.shape_cast %76 : vector<1x8x1xf32> to vector<8x1xf32>
    %78 = vector.broadcast %77 : vector<8x1xf32> to vector<8x128xf32>
    %79 = arith.mulf %75, %78 : vector<8x128xf32>
    %c1_59 = arith.constant 1 : index
    %c0_60 = arith.constant 0 : index
    %c0_61 = arith.constant 0 : index
    %80 = vector.load %arg9[%c1_59, %c0_60, %c0_61] : memref<3x8x1xf32, #tpu.memory_space<vmem>>, vector<1x8x1xf32>
    %81 = vector.shape_cast %80 : vector<1x8x1xf32> to vector<8x1xf32>
    %82 = vector.broadcast %81 : vector<8x1xf32> to vector<8x128xf32>
    %83 = arith.addf %79, %82 : vector<8x128xf32>
    %cst_62 = arith.constant 0.000000e+00 : f32
    %84 = vector.shape_cast %4 : vector<1x128xi1> to vector<1x128xi1>
    %85 = vector.broadcast %84 : vector<1x128xi1> to vector<8x128xi1>
    %86 = vector.broadcast %cst_62 : f32 to vector<8x128xf32>
    %87 = arith.select %85, %83, %86 : vector<8x128xi1>, vector<8x128xf32>
    %c0_63 = arith.constant 0 : index
    %c8 = arith.constant 8 : index
    %88 = vector.load %arg10[%c0_63, %c8] : memref<32x32xbf16, #tpu.memory_space<vmem>>, vector<32x8xbf16>
    %89 = arith.truncf %87 : vector<8x128xf32> to vector<8x128xbf16>
    %cst_64 = arith.constant dense<0.000000e+00> : vector<32x128xf32>
    %90 = tpu.matmul %88, %89, %cst_64 {dimension_numbers = #tpu.dot_dimension_numbers<[1], [0], [0], [1], [0, 0, 1, 1], [], []>} : vector<32x8xbf16>, vector<8x128xbf16>, vector<32x128xf32> -> vector<32x128xf32>
    %91 = arith.addf %58, %90 : vector<32x128xf32>
    %92 = vector.extract_strided_slice %22 {offsets = [16, 0], sizes = [8, 128], strides = [1, 1]} : vector<32x128xf32> to vector<8x128xf32>
    %93 = arith.addf %87, %92 : vector<8x128xf32>
    %94 = arith.truncf %93 : vector<8x128xf32> to vector<8x128xbf16>
    %c0_65 = arith.constant 0 : index
    %c2_66 = arith.constant 2 : index
    %95 = vector.load %arg21[%c0_65, %c2_66] : memref<8x132xbf16, #tpu.memory_space<vmem>>, vector<8x128xbf16>
    tpu.vector_store %arg21[%c0_65, %c2_66], %94 {strides = array<i32>} : memref<8x132xbf16, #tpu.memory_space<vmem>>, vector<8x128xbf16>,
    %c0_67 = arith.constant 0 : index
    %c0_68 = arith.constant 0 : index
    %96 = vector.load %arg21[%c0_67, %c0_68] : memref<8x132xbf16, #tpu.memory_space<vmem>>, vector<8x128xbf16>
    %c0_69 = arith.constant 0 : index
    %c2_70 = arith.constant 2 : index
    %97 = vector.load %arg21[%c0_69, %c2_70] : memref<8x132xbf16, #tpu.memory_space<vmem>>, vector<8x128xbf16>
    %c0_71 = arith.constant 0 : index
    %c4_72 = arith.constant 4 : index
    %98 = vector.load %arg21[%c0_71, %c4_72] : memref<8x132xbf16, #tpu.memory_space<vmem>>, vector<8x128xbf16>
    %99 = tpu.concatenate %96, %97, %98 in 0 : vector<8x128xbf16>, vector<8x128xbf16>, vector<8x128xbf16> -> vector<24x128xbf16>
    %c2_73 = arith.constant 2 : index
    %c0_74 = arith.constant 0 : index
    %c0_75 = arith.constant 0 : index
    %100 = vector.load %arg6[%c2_73, %c0_74, %c0_75] : memref<3x8x24xbf16, #tpu.memory_space<vmem>>, vector<1x8x24xbf16>
    %101 = vector.shape_cast %100 : vector<1x8x24xbf16> to vector<8x24xbf16>
    %cst_76 = arith.constant dense<0.000000e+00> : vector<8x128xf32>
    %102 = tpu.matmul %101, %99, %cst_76 {dimension_numbers = #tpu.dot_dimension_numbers<[1], [0], [0], [1], [0, 0, 1, 1], [], []>} : vector<8x24xbf16>, vector<24x128xbf16>, vector<8x128xf32> -> vector<8x128xf32>
    %c2_77 = arith.constant 2 : index
    %c0_78 = arith.constant 0 : index
    %c0_79 = arith.constant 0 : index
    %103 = vector.load %arg7[%c2_77, %c0_78, %c0_79] : memref<3x8x1xf32, #tpu.memory_space<vmem>>, vector<1x8x1xf32>
    %104 = vector.shape_cast %103 : vector<1x8x1xf32> to vector<8x1xf32>
    %105 = vector.broadcast %104 : vector<8x1xf32> to vector<8x128xf32>
    %106 = arith.addf %102, %105 : vector<8x128xf32>
    %cst_80 = arith.constant 0.000000e+00 : f32
    %107 = vector.broadcast %cst_80 : f32 to vector<8x128xf32>
    %108 = arith.maximumf %106, %107 : vector<8x128xf32>
    %c2_81 = arith.constant 2 : index
    %c0_82 = arith.constant 0 : index
    %c0_83 = arith.constant 0 : index
    %109 = vector.load %arg8[%c2_81, %c0_82, %c0_83] : memref<3x8x1xf32, #tpu.memory_space<vmem>>, vector<1x8x1xf32>
    %110 = vector.shape_cast %109 : vector<1x8x1xf32> to vector<8x1xf32>
    %111 = vector.broadcast %110 : vector<8x1xf32> to vector<8x128xf32>
    %112 = arith.mulf %108, %111 : vector<8x128xf32>
    %c2_84 = arith.constant 2 : index
    %c0_85 = arith.constant 0 : index
    %c0_86 = arith.constant 0 : index
    %113 = vector.load %arg9[%c2_84, %c0_85, %c0_86] : memref<3x8x1xf32, #tpu.memory_space<vmem>>, vector<1x8x1xf32>
    %114 = vector.shape_cast %113 : vector<1x8x1xf32> to vector<8x1xf32>
    %115 = vector.broadcast %114 : vector<8x1xf32> to vector<8x128xf32>
    %116 = arith.addf %112, %115 : vector<8x128xf32>
    %cst_87 = arith.constant 0.000000e+00 : f32
    %117 = vector.shape_cast %4 : vector<1x128xi1> to vector<1x128xi1>
    %118 = vector.broadcast %117 : vector<1x128xi1> to vector<8x128xi1>
    %119 = vector.broadcast %cst_87 : f32 to vector<8x128xf32>
    %120 = arith.select %118, %116, %119 : vector<8x128xi1>, vector<8x128xf32>
    %c0_88 = arith.constant 0 : index
    %c16 = arith.constant 16 : index
    %121 = vector.load %arg10[%c0_88, %c16] : memref<32x32xbf16, #tpu.memory_space<vmem>>, vector<32x8xbf16>
    %122 = arith.truncf %120 : vector<8x128xf32> to vector<8x128xbf16>
    %cst_89 = arith.constant dense<0.000000e+00> : vector<32x128xf32>
    %123 = tpu.matmul %121, %122, %cst_89 {dimension_numbers = #tpu.dot_dimension_numbers<[1], [0], [0], [1], [0, 0, 1, 1], [], []>} : vector<32x8xbf16>, vector<8x128xbf16>, vector<32x128xf32> -> vector<32x128xf32>
    %124 = arith.addf %91, %123 : vector<32x128xf32>
    %125 = vector.extract_strided_slice %22 {offsets = [24, 0], sizes = [8, 128], strides = [1, 1]} : vector<32x128xf32> to vector<8x128xf32>
    %c0_90 = arith.constant 0 : index
    %c24 = arith.constant 24 : index
    %126 = vector.load %arg10[%c0_90, %c24] : memref<32x32xbf16, #tpu.memory_space<vmem>>, vector<32x8xbf16>
    %127 = arith.truncf %125 : vector<8x128xf32> to vector<8x128xbf16>
    %cst_91 = arith.constant dense<0.000000e+00> : vector<32x128xf32>
    %128 = tpu.matmul %126, %127, %cst_91 {dimension_numbers = #tpu.dot_dimension_numbers<[1], [0], [0], [1], [0, 0, 1, 1], [], []>} : vector<32x8xbf16>, vector<8x128xbf16>, vector<32x128xf32> -> vector<32x128xf32>
    %129 = arith.addf %124, %128 : vector<32x128xf32>
    %c0_92 = arith.constant 0 : index
    %c0_93 = arith.constant 0 : index
    %130 = vector.load %arg11[%c0_92, %c0_93] : memref<32x1xf32, #tpu.memory_space<vmem>>, vector<32x1xf32>
    %131 = vector.broadcast %130 : vector<32x1xf32> to vector<32x128xf32>
    %132 = arith.addf %129, %131 : vector<32x128xf32>
    %cst_94 = arith.constant 0.000000e+00 : f32
    %133 = vector.broadcast %cst_94 : f32 to vector<32x128xf32>
    %134 = arith.maximumf %132, %133 : vector<32x128xf32>
    %c0_95 = arith.constant 0 : index
    %c0_96 = arith.constant 0 : index
    %135 = vector.load %arg12[%c0_95, %c0_96] : memref<32x1xf32, #tpu.memory_space<vmem>>, vector<32x1xf32>
    %136 = vector.broadcast %135 : vector<32x1xf32> to vector<32x128xf32>
    %137 = arith.mulf %134, %136 : vector<32x128xf32>
    %c0_97 = arith.constant 0 : index
    %c0_98 = arith.constant 0 : index
    %138 = vector.load %arg13[%c0_97, %c0_98] : memref<32x1xf32, #tpu.memory_space<vmem>>, vector<32x1xf32>
    %139 = vector.broadcast %138 : vector<32x1xf32> to vector<32x128xf32>
    %140 = arith.addf %137, %139 : vector<32x128xf32>
    %cst_99 = arith.constant 0.000000e+00 : f32
    %141 = vector.shape_cast %4 : vector<1x128xi1> to vector<1x128xi1>
    %142 = vector.broadcast %141 : vector<1x128xi1> to vector<32x128xi1>
    %143 = vector.broadcast %cst_99 : f32 to vector<32x128xf32>
    %144 = arith.select %142, %140, %143 : vector<32x128xi1>, vector<32x128xf32>
    %cst_100 = arith.constant dense<0.000000e+00> : vector<32xf32>
    %145 = vector.multi_reduction <add>, %144, %cst_100 [1] : vector<32x128xf32> to vector<32xf32>
    %146 = vector.shape_cast %145 : vector<32xf32> to vector<32x1xf32>
    %cst_101 = arith.constant 0.010416667 : f32
    %147 = vector.broadcast %cst_101 : f32 to vector<32x1xf32>
    %148 = arith.mulf %146, %147 : vector<32x1xf32>
    %c0_102 = arith.constant 0 : index
    %c0_103 = arith.constant 0 : index
    %149 = vector.load %arg14[%c0_102, %c0_103] : memref<32x32xbf16, #tpu.memory_space<vmem>>, vector<32x32xbf16>
    %150 = arith.truncf %148 : vector<32x1xf32> to vector<32x1xbf16>
    %cst_104 = arith.constant dense<0.000000e+00> : vector<32x1xf32>
    %151 = tpu.matmul %149, %150, %cst_104 {dimension_numbers = #tpu.dot_dimension_numbers<[1], [0], [0], [1], [0, 0, 1, 1], [], []>} : vector<32x32xbf16>, vector<32x1xbf16>, vector<32x1xf32> -> vector<32x1xf32>
    %c0_105 = arith.constant 0 : index
    %c0_106 = arith.constant 0 : index
    %152 = vector.load %arg15[%c0_105, %c0_106] : memref<32x1xf32, #tpu.memory_space<vmem>>, vector<32x1xf32>
    %153 = arith.addf %151, %152 : vector<32x1xf32>
    %cst_107 = arith.constant 0.000000e+00 : f32
    %154 = vector.broadcast %cst_107 : f32 to vector<32x1xf32>
    %155 = arith.maximumf %153, %154 : vector<32x1xf32>
    %c0_108 = arith.constant 0 : index
    %c0_109 = arith.constant 0 : index
    %156 = vector.load %arg16[%c0_108, %c0_109] : memref<32x1xf32, #tpu.memory_space<vmem>>, vector<32x1xf32>
    %157 = arith.mulf %155, %156 : vector<32x1xf32>
    %c0_110 = arith.constant 0 : index
    %c0_111 = arith.constant 0 : index
    %158 = vector.load %arg17[%c0_110, %c0_111] : memref<32x1xf32, #tpu.memory_space<vmem>>, vector<32x1xf32>
    %159 = arith.addf %157, %158 : vector<32x1xf32>
    %c0_112 = arith.constant 0 : index
    %c0_113 = arith.constant 0 : index
    %160 = vector.load %arg18[%c0_112, %c0_113] : memref<32x32xbf16, #tpu.memory_space<vmem>>, vector<32x32xbf16>
    %161 = arith.truncf %159 : vector<32x1xf32> to vector<32x1xbf16>
    %cst_114 = arith.constant dense<0.000000e+00> : vector<32x1xf32>
    %162 = tpu.matmul %160, %161, %cst_114 {dimension_numbers = #tpu.dot_dimension_numbers<[1], [0], [0], [1], [0, 0, 1, 1], [], []>} : vector<32x32xbf16>, vector<32x1xbf16>, vector<32x1xf32> -> vector<32x1xf32>
    %c0_115 = arith.constant 0 : index
    %c0_116 = arith.constant 0 : index
    %163 = vector.load %arg19[%c0_115, %c0_116] : memref<32x1xf32, #tpu.memory_space<vmem>>, vector<32x1xf32>
    %164 = arith.addf %162, %163 : vector<32x1xf32>
    %165 = arith.negf %164 : vector<32x1xf32>
    %166 = math.exp %165 : vector<32x1xf32>
    %cst_117 = arith.constant 1.000000e+00 : f32
    %167 = vector.broadcast %cst_117 : f32 to vector<32x1xf32>
    %168 = arith.addf %167, %166 : vector<32x1xf32>
    %169 = arith.divf %167, %168 : vector<32x1xf32>
    %170 = vector.broadcast %169 : vector<32x1xf32> to vector<32x128xf32>
    %171 = arith.mulf %144, %170 : vector<32x128xf32>
    %172 = arith.addf %171, %1 : vector<32x128xf32>
    %c0_118 = arith.constant 0 : index
    %c0_119 = arith.constant 0 : index
    %c0_120 = arith.constant 0 : index
    %173 = vector.load %arg20[%c0_118, %c0_119, %c0_120] : memref<1x32x128xf32, #tpu.memory_space<vmem>>, vector<1x32x128xf32>
    %174 = vector.shape_cast %173 : vector<1x32x128xf32> to vector<32x128xf32>
    %175 = vector.shape_cast %172 : vector<32x128xf32> to vector<1x32x128xf32>
    tpu.vector_store %arg20[%c0_118, %c0_119, %c0_120], %175 {strides = array<i32>} : memref<1x32x128xf32, #tpu.memory_space<vmem>>, vector<1x32x128xf32>,
    return
  }
  func.func @transform_0(%arg0: i32) -> (i32, i32, i32) {
    %c0_i32 = arith.constant 0 : i32
    %c0_i32_0 = arith.constant 0 : i32
    %c0_i32_1 = arith.constant 0 : i32
    return %arg0, %c0_i32, %c0_i32_0 : i32, i32, i32
  }
  func.func @transform_1(%arg0: i32) -> (i32, i32) {
    %c0_i32 = arith.constant 0 : i32
    %c0_i32_0 = arith.constant 0 : i32
    %c0_i32_1 = arith.constant 0 : i32
    return %c0_i32, %c0_i32_0 : i32, i32
  }
  func.func @transform_2(%arg0: i32) -> (i32, i32) {
    %c0_i32 = arith.constant 0 : i32
    %c0_i32_0 = arith.constant 0 : i32
    %c0_i32_1 = arith.constant 0 : i32
    return %c0_i32, %c0_i32_0 : i32, i32
  }
  func.func @transform_3(%arg0: i32) -> (i32, i32) {
    %c0_i32 = arith.constant 0 : i32
    %c0_i32_0 = arith.constant 0 : i32
    %c0_i32_1 = arith.constant 0 : i32
    return %c0_i32, %c0_i32_0 : i32, i32
  }
  func.func @transform_4(%arg0: i32) -> (i32, i32) {
    %c0_i32 = arith.constant 0 : i32
    %c0_i32_0 = arith.constant 0 : i32
    %c0_i32_1 = arith.constant 0 : i32
    return %c0_i32, %c0_i32_0 : i32, i32
  }
  func.func @transform_5(%arg0: i32) -> (i32, i32, i32) {
    %c0_i32 = arith.constant 0 : i32
    %c0_i32_0 = arith.constant 0 : i32
    %c0_i32_1 = arith.constant 0 : i32
    %c0_i32_2 = arith.constant 0 : i32
    return %c0_i32, %c0_i32_0, %c0_i32_1 : i32, i32, i32
  }
  func.func @transform_6(%arg0: i32) -> (i32, i32, i32) {
    %c0_i32 = arith.constant 0 : i32
    %c0_i32_0 = arith.constant 0 : i32
    %c0_i32_1 = arith.constant 0 : i32
    %c0_i32_2 = arith.constant 0 : i32
    return %c0_i32, %c0_i32_0, %c0_i32_1 : i32, i32, i32
  }
  func.func @transform_7(%arg0: i32) -> (i32, i32, i32) {
    %c0_i32 = arith.constant 0 : i32
    %c0_i32_0 = arith.constant 0 : i32
    %c0_i32_1 = arith.constant 0 : i32
    %c0_i32_2 = arith.constant 0 : i32
    return %c0_i32, %c0_i32_0, %c0_i32_1 : i32, i32, i32
  }
  func.func @transform_8(%arg0: i32) -> (i32, i32, i32) {
    %c0_i32 = arith.constant 0 : i32
    %c0_i32_0 = arith.constant 0 : i32
    %c0_i32_1 = arith.constant 0 : i32
    %c0_i32_2 = arith.constant 0 : i32
    return %c0_i32, %c0_i32_0, %c0_i32_1 : i32, i32, i32
  }
  func.func @transform_9(%arg0: i32) -> (i32, i32) {
    %c0_i32 = arith.constant 0 : i32
    %c0_i32_0 = arith.constant 0 : i32
    %c0_i32_1 = arith.constant 0 : i32
    return %c0_i32, %c0_i32_0 : i32, i32
  }
  func.func @transform_10(%arg0: i32) -> (i32, i32) {
    %c0_i32 = arith.constant 0 : i32
    %c0_i32_0 = arith.constant 0 : i32
    %c0_i32_1 = arith.constant 0 : i32
    return %c0_i32, %c0_i32_0 : i32, i32
  }
  func.func @transform_11(%arg0: i32) -> (i32, i32) {
    %c0_i32 = arith.constant 0 : i32
    %c0_i32_0 = arith.constant 0 : i32
    %c0_i32_1 = arith.constant 0 : i32
    return %c0_i32, %c0_i32_0 : i32, i32
  }
  func.func @transform_12(%arg0: i32) -> (i32, i32) {
    %c0_i32 = arith.constant 0 : i32
    %c0_i32_0 = arith.constant 0 : i32
    %c0_i32_1 = arith.constant 0 : i32
    return %c0_i32, %c0_i32_0 : i32, i32
  }
  func.func @transform_13(%arg0: i32) -> (i32, i32) {
    %c0_i32 = arith.constant 0 : i32
    %c0_i32_0 = arith.constant 0 : i32
    %c0_i32_1 = arith.constant 0 : i32
    return %c0_i32, %c0_i32_0 : i32, i32
  }
  func.func @transform_14(%arg0: i32) -> (i32, i32) {
    %c0_i32 = arith.constant 0 : i32
    %c0_i32_0 = arith.constant 0 : i32
    %c0_i32_1 = arith.constant 0 : i32
    return %c0_i32, %c0_i32_0 : i32, i32
  }
  func.func @transform_15(%arg0: i32) -> (i32, i32) {
    %c0_i32 = arith.constant 0 : i32
    %c0_i32_0 = arith.constant 0 : i32
    %c0_i32_1 = arith.constant 0 : i32
    return %c0_i32, %c0_i32_0 : i32, i32
  }
  func.func @transform_16(%arg0: i32) -> (i32, i32) {
    %c0_i32 = arith.constant 0 : i32
    %c0_i32_0 = arith.constant 0 : i32
    %c0_i32_1 = arith.constant 0 : i32
    return %c0_i32, %c0_i32_0 : i32, i32
  }
  func.func @transform_17(%arg0: i32) -> (i32, i32) {
    %c0_i32 = arith.constant 0 : i32
    %c0_i32_0 = arith.constant 0 : i32
    %c0_i32_1 = arith.constant 0 : i32
    return %c0_i32, %c0_i32_0 : i32, i32
  }
  func.func @transform_18(%arg0: i32) -> (i32, i32) {
    %c0_i32 = arith.constant 0 : i32
    %c0_i32_0 = arith.constant 0 : i32
    %c0_i32_1 = arith.constant 0 : i32
    return %c0_i32, %c0_i32_0 : i32, i32
  }
  func.func @transform_19(%arg0: i32) -> (i32, i32, i32) {
    %c0_i32 = arith.constant 0 : i32
    %c0_i32_0 = arith.constant 0 : i32
    %c0_i32_1 = arith.constant 0 : i32
    return %arg0, %c0_i32, %c0_i32_0 : i32, i32, i32
  }
}

</mosaic_0001>

<bundles_post_ra>
// kernel: tpu_custom_call.1
= control target key start
LH: loop header
LB: loop body
LE: loop exit
PB: predicated region body
PF: predicated region fallthrough
CT: control target
= control target key end

     0   :  { %s4310_s0 = inlined_call_operand.hbm [shape: f32[2,32,128], index: 0, kind: input, shape index: {}]   ;;  %s4311_s1 = inlined_call_operand.hbm [shape: bf16[32,32], index: 1, kind: input, shape index: {}]   ;;  %s4312_s2 = inlined_call_operand.hbm [shape: f32[32,1], index: 2, kind: input, shape index: {}]   ;;  %s4313_s3 = inlined_call_operand.hbm [shape: f32[32,1], index: 3, kind: input, shape index: {}]   ;;  %s4314_s4 = inlined_call_operand.hbm [shape: f32[32,1], index: 4, kind: input, shape index: {}]   ;;  %s4315_s5 = inlined_call_operand.hbm [shape: bf16[3,8,24], index: 5, kind: input, shape index: {}]   ;;  %s4316_s6 = inlined_call_operand.hbm [shape: f32[3,8,1], index: 6, kind: input, shape index: {}]   ;;  %s4317_s7 = inlined_call_operand.hbm [shape: f32[3,8,1], index: 7, kind: input, shape index: {}]   ;;  %s4318_s8 = inlined_call_operand.hbm [shape: f32[3,8,1], index: 8, kind: input, shape index: {}]   ;;  %s4319_s9 = inlined_call_operand.hbm [shape: bf16[32,32], index: 9, kind: input, shape index: {}]   ;;  %s4320_s10 = inlined_call_operand.hbm [shape: f32[32,1], index: 10, kind: input, shape index: {}]   ;;  %s4321_s11 = inlined_call_operand.hbm [shape: f32[32,1], index: 11, kind: input, shape index: {}]   ;;  %s4322_s12 = inlined_call_operand.hbm [shape: f32[32,1], index: 12, kind: input, shape index: {}]   ;;  %s4323_s13 = inlined_call_operand.hbm [shape: bf16[32,32], index: 13, kind: input, shape index: {}]   ;;  %s4324_s14 = inlined_call_operand.hbm [shape: f32[32,1], index: 14, kind: input, shape index: {}]   ;;  %s4325_s15 = inlined_call_operand.hbm [shape: f32[32,1], index: 15, kind: input, shape index: {}]   ;;  %s4326_s16 = inlined_call_operand.hbm [shape: f32[32,1], index: 16, kind: input, shape index: {}]   ;;  %s4327_s17 = inlined_call_operand.hbm [shape: bf16[32,32], index: 17, kind: input, shape index: {}]   ;;  %s4328_s18 = inlined_call_operand.hbm [shape: f32[32,1], index: 18, kind: input, shape index: {}]   ;;  %s4329_s19 = inlined_call_operand.hbm [shape: f32[2,32,128], index: 19, kind: output, shape index: {}]  }
   0x1   :  { %4355 = sst [smem:[#allocation51_spill]] %s4310_s0 }
   0x2   :  { %4356 = sst [smem:[#allocation52_spill]] %s4311_s1 }
   0x3   :  { %4357 = sst [smem:[#allocation53_spill]] %s4312_s2 }
   0x4   :  { %4358 = sst [smem:[#allocation54_spill]] %s4313_s3 }
   0x5   :  { %4359 = sst [smem:[#allocation55_spill]] %s4314_s4 }
   0x6   :  { %4360 = sst [smem:[#allocation56_spill]] %s4315_s5 }
   0x7   :  { %4361 = sst [smem:[#allocation57_spill]] %s4316_s6 }
   0x8   :  { %4362 = sst [smem:[#allocation58_spill]] %s4317_s7 }
   0x9   :  { %4363 = sst [smem:[#allocation59_spill]] %s4324_s14 }
   0xa   :  { %4364 = sst [smem:[#allocation60_spill]] %s4326_s16 }
   0xb   :  { %4365 = sst [smem:[#allocation61_spill]] %s4328_s18 }
   0xc   :  { %4366 = sst [smem:[#allocation62_spill]] %s4329_s19 }
   0xd   :  { %24 = vsyncpa [#allocation4], 0 }
   0xe   :  { %26 = vsyncpa [#allocation4 + $0x1], 0 }
   0xf   :  { %27 = vsyncpa [#allocation7], 0 }
  0x10   :  { %28 = vsyncpa [#allocation10], 0 }
  0x11   :  { %29 = vsyncpa [#allocation13], 0 }
  0x12   :  { %30 = vsyncpa [#allocation16], 0 }
  0x13   :  { %31 = vsyncpa [#allocation19], 0 }
  0x14   :  { %32 = vsyncpa [#allocation22], 0 }
  0x15   :  { %33 = vsyncpa [#allocation25], 0 }
  0x16   :  { %34 = vsyncpa [#allocation28], 0 }
  0x17   :  { %35 = vsyncpa [#allocation31], 0 }
  0x18   :  { %36 = vsyncpa [#allocation5], 0 }
  0x19   :  { %38 = vsyncpa [#allocation5 + $0x1], 0  ;;  %s3530_s0 = smov 0   ;;  %s3532_s30 = smov 0  }
  0x1a   :  { %s3534_s20 = smov 0   ;;  %s3536_s21 = smov 0  }
  0x1b LB: > { %4367 = sst [smem:[#allocation45_spill]] %s3381_s0  ;;  %s3395_s1 = smov [#allocation6]   ;;  %s3393_s21 = sphi %s3536_s21, %s4434_s21   ;;  %s3389_s20 = sphi %s3534_s20, %s4433_s20   ;;  %s3385_s30 = sphi %s3532_s30, %s4432_s30   ;;  %s3381_s0 = sphi %s3530_s0, %s4431_s0  }
  0x1c   : > { %4368 = sst [smem:[#allocation46_spill]] %s3385_s30  ;;  %s491_s22 = sshll.u32 %s3395_s1, 4  ;;  %s3556_s22 = int_to_ptr.vmem [resolvable:$true] %s491_s22 }
  0x1d   : > { %4369 = sst [smem:[#allocation47_spill]] %s3389_s20  ;;  %s3551_s2 = sadd.s32 4294967295, %s3393_s21  }
  0x1e   : > { %4370 = sst [smem:[#allocation48_spill]] %s3393_s21  ;;  %p2262_p0 = scmp.ge.s32.totalorder %s3393_s21, 1 }
  0x1f   : > { %4371 = sst [smem:[#allocation49_spill]] %s3551_s2  ;;  %p4346_p1 = scmp.eq.s32.totalorder %s3551_s2, 0 }
  0x20   : > { %p479_p2 = scmp.lt.s32.totalorder %s3393_s21, 3  ;;  %s3396_s25 = smov [#allocation9]  }
  0x21   : > { %s517_s3 = sshll.u32 %s3396_s25, 4  ;;  %s3397_s26 = smov [#allocation12]   ;;  %s3571_s3 = int_to_ptr.vmem [resolvable:$true] %s517_s3 }
  0x22   : > { %p3558_p3 = pnand %p2262_p0, %p479_p2  ;;  %s3573_s27 = sshll.u32 %s3397_s26, 4  ;;  %s544_s27 = int_to_ptr.vmem [resolvable:$true] %s3573_s27 }
  0x23   : > { %s4375_s1 = sld [smem:[#allocation52_spill]] }
  0x24   : > { %s4372_s23 = scalar_select %p3558_p3, 1, 0 }
  0x25   : > { %p2555_p5 = pneg %p3558_p3 }
  0x26   : > { %4373 = sst [smem:[#allocation50_spill]] %s4372_s23 }
  0x27   : > { %p3567_p6 = pnand %p2555_p5, %p4346_p1 }
  0x29   : > { %s2757_s19 = scalar_lea.hbm %s4375_s1, 256  ;;  %p3583_p8 = pneg %p3567_p6 }
  0x2a   : > { %p2758_p7 = scmp.ne.s32.totalorder %s4375_s1, %s2757_s19  ;;  %p2764_p11 = scmp.lt.u32.totalorder %s2757_s19, %s4375_s1 }
  0x2c   : > { %p2760_p9 = pnand %p3583_p8, %p2758_p7 }
  0x2e   : > { %p2761_p10 = pneg %p2760_p9 }
  0x30   : > { %p2766_p12 = pnand %p2764_p11, %p2761_p10 }
  0x32   : > { %2769 = shalt.err (!%p2766_p12)
}
  0x33   : > { %s2770_s0 = scalar_lea.vmem %s3556_s22, 256  ;;  %p2778_p5 = scmp.lt.s32.totalorder %s3556_s22, %s3556_s22 }
  0x34   : > { %p2771_p13 = scmp.ne.s32.totalorder %s3556_s22, %s2770_s0  ;;  %p2779_p4 = scmp.lt.s32.totalorder %s2770_s0, %s2770_s0 }
  0x36   : > { %p2773_p0 = pnand %p2771_p13, %p3583_p8  ;;  %p2780_p7 = por %p2779_p4, %p2778_p5 }
  0x38   : > { %p2774_p2 = pneg %p2773_p0 }
  0x3a   : > { %p2781_p9 = pnand %p2780_p7, %p2774_p2 }
  0x3c   : > { %2784 = shalt.err (!%p2781_p9)
}
  0x3d   : > { %s3398_s23 = smov 64   ;;  %s3399_s19 = smov 4  }
  0x3e   : > { %2558 = dma.hbm_to_vmem [thread:$0]  (!%p3567_p6), %s4375_s1, 256, %s3556_s22, [#allocation7], %s3398_s23, %s3398_s23, %s3399_s19  }
  0x3f   : > { %s4377_s30 = sld [smem:[#allocation54_spill]] }
  0x45   : > { %s4378_s18 = smov %s4377_s30  ;;  %s2785_s0 = scalar_lea.hbm %s4377_s30, 512 }
  0x46   : > { %p2786_p4 = scmp.ne.s32.totalorder %s4378_s18, %s2785_s0  ;;  %p2792_p12 = scmp.lt.u32.totalorder %s2785_s0, %s4378_s18 }
  0x48   : > { %p2788_p10 = pnand %p2786_p4, %p3583_p8 }
  0x4a   : > { %p2789_p11 = pneg %p2788_p10 }
  0x4c   : > { %p2794_p13 = pnand %p2792_p12, %p2789_p11 }
  0x4e   : > { %2797 = shalt.err (!%p2794_p13)
}
  0x4f   : > { %s2798_s22 = scalar_lea.vmem %s3571_s3, 512  ;;  %p2806_p7 = scmp.lt.s32.totalorder %s3571_s3, %s3571_s3 }
  0x50   : > { %p2799_p0 = scmp.ne.s32.totalorder %s3571_s3, %s2798_s22  ;;  %p2807_p9 = scmp.lt.s32.totalorder %s2798_s22, %s2798_s22 }
  0x52   : > { %p2801_p2 = pnand %p2799_p0, %p3583_p8  ;;  %p2808_p4 = por %p2807_p9, %p2806_p7 }
  0x54   : > { %p2802_p5 = pneg %p2801_p2 }
  0x56   : > { %p2809_p10 = pnand %p2808_p4, %p2802_p5 }
  0x58   : > { %2812 = shalt.err (!%p2809_p10)
}
  0x59   : > { %s4348_s30 = smov 128   ;;  %s4350_s14 = smov 8  }
  0x5a   : > { %2564 = dma.hbm_to_vmem [thread:$0]  (!%p3567_p6), %s4378_s18, 512, %s3571_s3, [#allocation10], %s4348_s30, %s4348_s30, %s4350_s14  }
  0x5b   : > { %s4379_s5 = sld [smem:[#allocation56_spill]] }
  0x61   : > { %s2813_s29 = scalar_lea.hbm %s4379_s5, 192 }
  0x62   : > { %p2814_p11 = scmp.ne.s32.totalorder %s4379_s5, %s2813_s29  ;;  %p2820_p0 = scmp.lt.u32.totalorder %s2813_s29, %s4379_s5 }
  0x64   : > { %p2816_p12 = pnand %p2814_p11, %p3583_p8 }
  0x66   : > { %p2817_p13 = pneg %p2816_p12 }
  0x68   : > { %p2822_p2 = pnand %p2820_p0, %p2817_p13 }
  0x6a   : > { %2825 = shalt.err (!%p2822_p2)
}
  0x6b   : > { %s2826_s16 = scalar_lea.vmem %s544_s27, 192  ;;  %p2834_p4 = scmp.lt.s32.totalorder %s544_s27, %s544_s27 }
  0x6c   : > { %p2827_p5 = scmp.ne.s32.totalorder %s544_s27, %s2826_s16  ;;  %p2835_p10 = scmp.lt.s32.totalorder %s2826_s16, %s2826_s16 }
  0x6e   : > { %p2829_p7 = pnand %p2827_p5, %p3583_p8  ;;  %p2836_p1 = por %p2835_p10, %p2834_p4 }
  0x70   : > { %p2830_p9 = pneg %p2829_p7 }
  0x72   : > { %p2837_p3 = pnand %p2836_p1, %p2830_p9 }
  0x74   : > { %2840 = shalt.err (!%p2837_p3)
}
  0x75   : > { %2570 = dma.hbm_to_vmem [thread:$0]  (!%p3567_p6), %s4379_s5, 192, %s544_s27, [#allocation13], %s3398_s23, %s3398_s23, %s3399_s19  }
  0x76   : > { %s3402_s21 = smov [#allocation15]   ;;  %s3403_s29 = smov [#allocation18]  }
  0x77   : > { %s569_s28 = sshll.u32 %s3402_s21, 4  ;;  %s595_s25 = sshll.u32 %s3403_s29, 4  ;;  %s570_s28 = int_to_ptr.vmem [resolvable:$true] %s569_s28  ;;  %s596_s25 = int_to_ptr.vmem [resolvable:$true] %s595_s25 }
  0x78   : > { %s4380_s7 = sld [smem:[#allocation58_spill]] }
  0x7e   : > { %s2841_s22 = scalar_lea.hbm %s4380_s7, 384 }
  0x7f   : > { %p2842_p1 = scmp.ne.s32.totalorder %s4380_s7, %s2841_s22  ;;  %p2848_p12 = scmp.lt.u32.totalorder %s2841_s22, %s4380_s7 }
  0x81   : > { %p2844_p3 = pnand %p2842_p1, %p3583_p8 }
  0x83   : > { %p2845_p11 = pneg %p2844_p3 }
  0x85   : > { %p2850_p13 = pnand %p2848_p12, %p2845_p11 }
  0x87   : > { %2853 = shalt.err (!%p2850_p13)
}
  0x88   : > { %s2854_s27 = scalar_lea.vmem %s570_s28, 384  ;;  %p2862_p7 = scmp.lt.s32.totalorder %s570_s28, %s570_s28 }
  0x89   : > { %p2855_p0 = scmp.ne.s32.totalorder %s570_s28, %s2854_s27  ;;  %p2863_p9 = scmp.lt.s32.totalorder %s2854_s27, %s2854_s27 }
  0x8b   : > { %p2857_p2 = pnand %p2855_p0, %p3583_p8  ;;  %p2864_p4 = por %p2863_p9, %p2862_p7 }
  0x8d   : > { %p2858_p5 = pneg %p2857_p2 }
  0x8f   : > { %p2865_p10 = pnand %p2864_p4, %p2858_p5 }
  0x91   : > { %2868 = shalt.err (!%p2865_p10)
}
  0x92   : > { %s4381_s30 = smov 8   ;;  %s4382_s20 = smov 128  }
  0x93   : > { %2576 = dma.hbm_to_vmem [thread:$0]  (!%p3567_p6), %s4380_s7, 384, %s570_s28, [#allocation16], %s4382_s20, %s4382_s20, %s4381_s30  }
  0x94   : > { %s2869_s0 = scalar_lea.hbm %s4319_s9, 256 }
  0x95   : > { %p2870_p1 = scmp.ne.s32.totalorder %s4319_s9, %s2869_s0  ;;  %p2876_p12 = scmp.lt.u32.totalorder %s2869_s0, %s4319_s9 }
  0x97   : > { %p2872_p3 = pnand %p2870_p1, %p3583_p8 }
  0x99   : > { %p2873_p11 = pneg %p2872_p3 }
  0x9b   : > { %p2878_p13 = pnand %p2876_p12, %p2873_p11 }
  0x9d   : > { %2881 = shalt.err (!%p2878_p13)
}
  0x9e   : > { %s2882_s14 = scalar_lea.vmem %s596_s25, 256  ;;  %p2890_p7 = scmp.lt.s32.totalorder %s596_s25, %s596_s25 }
  0x9f   : > { %p2883_p0 = scmp.ne.s32.totalorder %s596_s25, %s2882_s14  ;;  %p2891_p9 = scmp.lt.s32.totalorder %s2882_s14, %s2882_s14 }
  0xa1   : > { %p2885_p2 = pnand %p2883_p0, %p3583_p8  ;;  %p2892_p4 = por %p2891_p9, %p2890_p7 }
  0xa3   : > { %p2886_p5 = pneg %p2885_p2 }
  0xa5   : > { %p2893_p10 = pnand %p2892_p4, %p2886_p5 }
  0xa7   : > { %2896 = shalt.err (!%p2893_p10)
}
  0xa8   : > { %2582 = dma.hbm_to_vmem [thread:$0]  (!%p3567_p6), %s4319_s9, 256, %s596_s25, [#allocation19], %s3398_s23, %s3398_s23, %s3399_s19  }
  0xa9   : > { %s3404_s29 = smov [#allocation21]   ;;  %s3405_s0 = smov [#allocation24]  }
  0xaa   : > { %s621_s26 = sshll.u32 %s3404_s29, 4  ;;  %s647_s22 = sshll.u32 %s3405_s0, 4  ;;  %s622_s26 = int_to_ptr.vmem [resolvable:$true] %s621_s26  ;;  %s648_s22 = int_to_ptr.vmem [resolvable:$true] %s647_s22 }
  0xab   : > { %s2897_s27 = scalar_lea.hbm %s4321_s11, 512 }
  0xac   : > { %p2898_p1 = scmp.ne.s32.totalorder %s4321_s11, %s2897_s27  ;;  %p2904_p12 = scmp.lt.u32.totalorder %s2897_s27, %s4321_s11 }
  0xae   : > { %p2900_p3 = pnand %p2898_p1, %p3583_p8 }
  0xb0   : > { %p2901_p11 = pneg %p2900_p3 }
  0xb2   : > { %p2906_p13 = pnand %p2904_p12, %p2901_p11 }
  0xb4   : > { %2909 = shalt.err (!%p2906_p13)
}
  0xb5   : > { %s2910_s25 = scalar_lea.vmem %s622_s26, 512  ;;  %p2918_p7 = scmp.lt.s32.totalorder %s622_s26, %s622_s26 }
  0xb6   : > { %p2911_p0 = scmp.ne.s32.totalorder %s622_s26, %s2910_s25  ;;  %p2919_p9 = scmp.lt.s32.totalorder %s2910_s25, %s2910_s25 }
  0xb8   : > { %p2913_p2 = pnand %p2911_p0, %p3583_p8  ;;  %p2920_p4 = por %p2919_p9, %p2918_p7 }
  0xba   : > { %p2914_p5 = pneg %p2913_p2 }
  0xbc   : > { %p2921_p10 = pnand %p2920_p4, %p2914_p5 }
  0xbe   : > { %2924 = shalt.err (!%p2921_p10)
}
  0xbf   : > { %2588 = dma.hbm_to_vmem [thread:$0]  (!%p3567_p6), %s4321_s11, 512, %s622_s26, [#allocation22], %s4382_s20, %s4382_s20, %s4381_s30  }
  0xc0   : > { %s2925_s0 = scalar_lea.hbm %s4323_s13, 256 }
  0xc1   : > { %p2926_p1 = scmp.ne.s32.totalorder %s4323_s13, %s2925_s0  ;;  %p2932_p12 = scmp.lt.u32.totalorder %s2925_s0, %s4323_s13 }
  0xc3   : > { %p2928_p3 = pnand %p2926_p1, %p3583_p8 }
  0xc5   : > { %p2929_p11 = pneg %p2928_p3 }
  0xc7   : > { %p2934_p13 = pnand %p2932_p12, %p2929_p11 }
  0xc9   : > { %2937 = shalt.err (!%p2934_p13)
}
  0xca   : > { %s2938_s28 = scalar_lea.vmem %s648_s22, 256  ;;  %p2946_p7 = scmp.lt.s32.totalorder %s648_s22, %s648_s22 }
  0xcb   : > { %p2939_p0 = scmp.ne.s32.totalorder %s648_s22, %s2938_s28  ;;  %p2947_p9 = scmp.lt.s32.totalorder %s2938_s28, %s2938_s28 }
  0xcd   : > { %p2941_p2 = pnand %p2939_p0, %p3583_p8  ;;  %p2948_p4 = por %p2947_p9, %p2946_p7 }
  0xcf   : > { %p2942_p5 = pneg %p2941_p2 }
  0xd1   : > { %p2949_p10 = pnand %p2948_p4, %p2942_p5 }
  0xd3   : > { %2952 = shalt.err (!%p2949_p10)
}
  0xd4   : > { %2594 = dma.hbm_to_vmem [thread:$0]  (!%p3567_p6), %s4323_s13, 256, %s648_s22, [#allocation25], %s3398_s23, %s3398_s23, %s3399_s19  }
  0xd5   : > { %s3406_s5 = smov [#allocation27]   ;;  %s3407_s21 = smov [#allocation30]  }
  0xd6   : > { %s673_s1 = sshll.u32 %s3406_s5, 4  ;;  %s699_s29 = sshll.u32 %s3407_s21, 4  ;;  %s674_s1 = int_to_ptr.vmem [resolvable:$true] %s673_s1  ;;  %s700_s29 = int_to_ptr.vmem [resolvable:$true] %s699_s29 }
  0xd7   : > { %s2953_s3 = scalar_lea.hbm %s4325_s15, 512 }
  0xd8   : > { %p2954_p1 = scmp.ne.s32.totalorder %s4325_s15, %s2953_s3  ;;  %p2960_p12 = scmp.lt.u32.totalorder %s2953_s3, %s4325_s15 }
  0xda   : > { %p2956_p3 = pnand %p2954_p1, %p3583_p8 }
  0xdc   : > { %p2957_p11 = pneg %p2956_p3 }
  0xde   : > { %p2962_p13 = pnand %p2960_p12, %p2957_p11 }
  0xe0   : > { %2965 = shalt.err (!%p2962_p13)
}
  0xe1   : > { %s2966_s22 = scalar_lea.vmem %s674_s1, 512  ;;  %p2974_p7 = scmp.lt.s32.totalorder %s674_s1, %s674_s1 }
  0xe2   : > { %p2967_p0 = scmp.ne.s32.totalorder %s674_s1, %s2966_s22  ;;  %p2975_p9 = scmp.lt.s32.totalorder %s2966_s22, %s2966_s22 }
  0xe4   : > { %p2969_p2 = pnand %p2967_p0, %p3583_p8  ;;  %p2976_p4 = por %p2975_p9, %p2974_p7 }
  0xe6   : > { %p2970_p5 = pneg %p2969_p2 }
  0xe8   : > { %p2977_p10 = pnand %p2976_p4, %p2970_p5 }
  0xea   : > { %2980 = shalt.err (!%p2977_p10)
}
  0xeb   : > { %2600 = dma.hbm_to_vmem [thread:$0]  (!%p3567_p6), %s4325_s15, 512, %s674_s1, [#allocation28], %s4382_s20, %s4382_s20, %s4381_s30  }
  0xec   : > { %s2981_s16 = scalar_lea.hbm %s4327_s17, 256 }
  0xed   : > { %p2982_p1 = scmp.ne.s32.totalorder %s4327_s17, %s2981_s16  ;;  %p2988_p12 = scmp.lt.u32.totalorder %s2981_s16, %s4327_s17 }
  0xef   : > { %p2984_p3 = pnand %p2982_p1, %p3583_p8 }
  0xf1   : > { %p2985_p11 = pneg %p2984_p3 }
  0xf3   : > { %p2990_p13 = pnand %p2988_p12, %p2985_p11 }
  0xf5   : > { %2993 = shalt.err (!%p2990_p13)
}
  0xf6   : > { %s2994_s26 = scalar_lea.vmem %s700_s29, 256  ;;  %p3002_p7 = scmp.lt.s32.totalorder %s700_s29, %s700_s29 }
  0xf7   : > { %p2995_p0 = scmp.ne.s32.totalorder %s700_s29, %s2994_s26  ;;  %p3003_p9 = scmp.lt.s32.totalorder %s2994_s26, %s2994_s26 }
  0xf9   : > { %p2997_p2 = pnand %p2995_p0, %p3583_p8  ;;  %p3004_p4 = por %p3003_p9, %p3002_p7 }
  0xfb   : > { %p2998_p5 = pneg %p2997_p2 }
  0xfd   : > { %p3005_p10 = pnand %p3004_p4, %p2998_p5 }
  0xff   : > { %3008 = shalt.err (!%p3005_p10)
}
 0x100   : > { %2606 = dma.hbm_to_vmem [thread:$0]  (!%p3567_p6), %s4327_s17, 256, %s700_s29, [#allocation31], %s3398_s23, %s3398_s23, %s3399_s19  }
 0x101   : > { %s3408_s25 = smov [#allocation8]   ;;  %s3409_s21 = smov [#allocation11]  }
 0x102   : > { %s504_s5 = sshll.u32 %s3408_s25, 4  ;;  %s530_s0 = sshll.u32 %s3409_s21, 4  ;;  %s505_s5 = int_to_ptr.vmem [resolvable:$true] %s504_s5  ;;  %s531_s0 = int_to_ptr.vmem [resolvable:$true] %s530_s0 }
 0x103   : > { %s4383_s27 = sld [smem:[#allocation53_spill]] }
 0x109   : > { %s3009_s14 = scalar_lea.hbm %s4383_s27, 512 }
 0x10a   : > { %p3010_p1 = scmp.ne.s32.totalorder %s4383_s27, %s3009_s14  ;;  %p3016_p12 = scmp.lt.u32.totalorder %s3009_s14, %s4383_s27 }
 0x10c   : > { %p3012_p3 = pnand %p3010_p1, %p3583_p8 }
 0x10e   : > { %p3013_p11 = pneg %p3012_p3 }
 0x110   : > { %p3018_p13 = pnand %p3016_p12, %p3013_p11 }
 0x112   : > { %3021 = shalt.err (!%p3018_p13)
}
 0x113   : > { %s3022_s23 = scalar_lea.vmem %s505_s5, 512  ;;  %p3030_p7 = scmp.lt.s32.totalorder %s505_s5, %s505_s5 }
 0x114   : > { %p3023_p0 = scmp.ne.s32.totalorder %s505_s5, %s3022_s23  ;;  %p3031_p9 = scmp.lt.s32.totalorder %s3022_s23, %s3022_s23 }
 0x116   : > { %p3025_p2 = pnand %p3023_p0, %p3583_p8  ;;  %p3032_p4 = por %p3031_p9, %p3030_p7 }
 0x118   : > { %p3026_p5 = pneg %p3025_p2 }
 0x11a   : > { %p3033_p10 = pnand %p3032_p4, %p3026_p5 }
 0x11c   : > { %3036 = shalt.err (!%p3033_p10)
}
 0x11d   : > { %2561 = dma.hbm_to_vmem [thread:$0]  (!%p3567_p6), %s4383_s27, 512, %s505_s5, [#allocation7], %s4382_s20, %s4382_s20, %s4381_s30  }
 0x11e   : > { %s4384_s4 = sld [smem:[#allocation55_spill]] }
 0x124   : > { %s3037_s25 = scalar_lea.hbm %s4384_s4, 512 }
 0x125   : > { %p3038_p1 = scmp.ne.s32.totalorder %s4384_s4, %s3037_s25  ;;  %p3044_p12 = scmp.lt.u32.totalorder %s3037_s25, %s4384_s4 }
 0x127   : > { %p3040_p3 = pnand %p3038_p1, %p3583_p8 }
 0x129   : > { %p3041_p11 = pneg %p3040_p3 }
 0x12b   : > { %p3046_p13 = pnand %p3044_p12, %p3041_p11 }
 0x12d   : > { %3049 = shalt.err (!%p3046_p13)
}
 0x12e   : > { %s3050_s28 = scalar_lea.vmem %s531_s0, 512  ;;  %p3058_p7 = scmp.lt.s32.totalorder %s531_s0, %s531_s0 }
 0x12f   : > { %p3051_p0 = scmp.ne.s32.totalorder %s531_s0, %s3050_s28  ;;  %p3059_p9 = scmp.lt.s32.totalorder %s3050_s28, %s3050_s28 }
 0x131   : > { %p3053_p2 = pnand %p3051_p0, %p3583_p8  ;;  %p3060_p4 = por %p3059_p9, %p3058_p7 }
 0x133   : > { %p3054_p5 = pneg %p3053_p2 }
 0x135   : > { %p3061_p10 = pnand %p3060_p4, %p3054_p5 }
 0x137   : > { %3064 = shalt.err (!%p3061_p10)
}
 0x138   : > { %2567 = dma.hbm_to_vmem [thread:$0]  (!%p3567_p6), %s4384_s4, 512, %s531_s0, [#allocation10], %s4382_s20, %s4382_s20, %s4381_s30  }
 0x139   : > { %s3410_s1 = smov [#allocation14]   ;;  %s3411_s7 = smov [#allocation17]  }
 0x13a   : > { %s556_s23 = sshll.u32 %s3410_s1, 4  ;;  %s582_s19 = sshll.u32 %s3411_s7, 4  ;;  %s557_s23 = int_to_ptr.vmem [resolvable:$true] %s556_s23  ;;  %s583_s19 = int_to_ptr.vmem [resolvable:$true] %s582_s19 }
 0x13b   : > { %s4385_s6 = sld [smem:[#allocation57_spill]] }
 0x141   : > { %s3065_s25 = scalar_lea.hbm %s4385_s6, 384 }
 0x142   : > { %p3066_p1 = scmp.ne.s32.totalorder %s4385_s6, %s3065_s25  ;;  %p3072_p12 = scmp.lt.u32.totalorder %s3065_s25, %s4385_s6 }
 0x144   : > { %p3068_p3 = pnand %p3066_p1, %p3583_p8 }
 0x146   : > { %p3069_p11 = pneg %p3068_p3 }
 0x148   : > { %p3074_p13 = pnand %p3072_p12, %p3069_p11 }
 0x14a   : > { %3077 = shalt.err (!%p3074_p13)
}
 0x14b   : > { %s3078_s0 = scalar_lea.vmem %s557_s23, 384  ;;  %p3086_p7 = scmp.lt.s32.totalorder %s557_s23, %s557_s23 }
 0x14c   : > { %p3079_p0 = scmp.ne.s32.totalorder %s557_s23, %s3078_s0  ;;  %p3087_p9 = scmp.lt.s32.totalorder %s3078_s0, %s3078_s0 }
 0x14e   : > { %p3081_p2 = pnand %p3079_p0, %p3583_p8  ;;  %p3088_p4 = por %p3087_p9, %p3086_p7 }
 0x150   : > { %p3082_p5 = pneg %p3081_p2 }
 0x152   : > { %p3089_p10 = pnand %p3088_p4, %p3082_p5 }
 0x154   : > { %3092 = shalt.err (!%p3089_p10)
}
 0x155   : > { %2573 = dma.hbm_to_vmem [thread:$0]  (!%p3567_p6), %s4385_s6, 384, %s557_s23, [#allocation13], %s4382_s20, %s4382_s20, %s4381_s30  }
 0x156   : > { %s3093_s7 = scalar_lea.hbm %s4318_s8, 384 }
 0x157   : > { %p3094_p1 = scmp.ne.s32.totalorder %s4318_s8, %s3093_s7  ;;  %p3100_p12 = scmp.lt.u32.totalorder %s3093_s7, %s4318_s8 }
 0x159   : > { %p3096_p3 = pnand %p3094_p1, %p3583_p8 }
 0x15b   : > { %p3097_p11 = pneg %p3096_p3 }
 0x15d   : > { %p3102_p13 = pnand %p3100_p12, %p3097_p11 }
 0x15f   : > { %3105 = shalt.err (!%p3102_p13)
}
 0x160   : > { %s3106_s16 = scalar_lea.vmem %s583_s19, 384  ;;  %p3114_p7 = scmp.lt.s32.totalorder %s583_s19, %s583_s19 }
 0x161   : > { %p3107_p0 = scmp.ne.s32.totalorder %s583_s19, %s3106_s16  ;;  %p3115_p9 = scmp.lt.s32.totalorder %s3106_s16, %s3106_s16 }
 0x163   : > { %p3109_p2 = pnand %p3107_p0, %p3583_p8  ;;  %p3116_p4 = por %p3115_p9, %p3114_p7 }
 0x165   : > { %p3110_p5 = pneg %p3109_p2 }
 0x167   : > { %p3117_p10 = pnand %p3116_p4, %p3110_p5 }
 0x169   : > { %3120 = shalt.err (!%p3117_p10)
}
 0x16a   : > { %2579 = dma.hbm_to_vmem [thread:$0]  (!%p3567_p6), %s4318_s8, 384, %s583_s19, [#allocation16], %s4382_s20, %s4382_s20, %s4381_s30  }
 0x16b   : > { %s3412_s14 = smov [#allocation20]   ;;  %s3413_s28 = smov [#allocation23]  }
 0x16c   : > { %s608_s0 = sshll.u32 %s3412_s14, 4  ;;  %s634_s5 = sshll.u32 %s3413_s28, 4  ;;  %s609_s0 = int_to_ptr.vmem [resolvable:$true] %s608_s0  ;;  %s635_s5 = int_to_ptr.vmem [resolvable:$true] %s634_s5 }
 0x16d   : > { %s3121_s7 = scalar_lea.hbm %s4320_s10, 512 }
 0x16e   : > { %p3122_p1 = scmp.ne.s32.totalorder %s4320_s10, %s3121_s7  ;;  %p3128_p12 = scmp.lt.u32.totalorder %s3121_s7, %s4320_s10 }
 0x170   : > { %p3124_p3 = pnand %p3122_p1, %p3583_p8 }
 0x172   : > { %p3125_p11 = pneg %p3124_p3 }
 0x174   : > { %p3130_p13 = pnand %p3128_p12, %p3125_p11 }
 0x176   : > { %3133 = shalt.err (!%p3130_p13)
}
 0x177   : > { %s3134_s19 = scalar_lea.vmem %s609_s0, 512  ;;  %p3142_p7 = scmp.lt.s32.totalorder %s609_s0, %s609_s0 }
 0x178   : > { %p3135_p0 = scmp.ne.s32.totalorder %s609_s0, %s3134_s19  ;;  %p3143_p9 = scmp.lt.s32.totalorder %s3134_s19, %s3134_s19 }
 0x17a   : > { %p3137_p2 = pnand %p3135_p0, %p3583_p8  ;;  %p3144_p4 = por %p3143_p9, %p3142_p7 }
 0x17c   : > { %p3138_p5 = pneg %p3137_p2 }
 0x17e   : > { %p3145_p10 = pnand %p3144_p4, %p3138_p5 }
 0x180   : > { %3148 = shalt.err (!%p3145_p10)
}
 0x181   : > { %2585 = dma.hbm_to_vmem [thread:$0]  (!%p3567_p6), %s4320_s10, 512, %s609_s0, [#allocation19], %s4382_s20, %s4382_s20, %s4381_s30  }
 0x182   : > { %s3149_s28 = scalar_lea.hbm %s4322_s12, 512 }
 0x183   : > { %p3150_p1 = scmp.ne.s32.totalorder %s4322_s12, %s3149_s28  ;;  %p3156_p12 = scmp.lt.u32.totalorder %s3149_s28, %s4322_s12 }
 0x185   : > { %p3152_p3 = pnand %p3150_p1, %p3583_p8 }
 0x187   : > { %p3153_p11 = pneg %p3152_p3 }
 0x189   : > { %p3158_p13 = pnand %p3156_p12, %p3153_p11 }
 0x18b   : > { %3161 = shalt.err (!%p3158_p13)
}
 0x18c   : > { %s3162_s22 = scalar_lea.vmem %s635_s5, 512  ;;  %p3170_p7 = scmp.lt.s32.totalorder %s635_s5, %s635_s5 }
 0x18d   : > { %p3163_p0 = scmp.ne.s32.totalorder %s635_s5, %s3162_s22  ;;  %p3171_p9 = scmp.lt.s32.totalorder %s3162_s22, %s3162_s22 }
 0x18f   : > { %p3165_p2 = pnand %p3163_p0, %p3583_p8  ;;  %p3172_p4 = por %p3171_p9, %p3170_p7 }
 0x191   : > { %p3166_p5 = pneg %p3165_p2 }
 0x193   : > { %p3173_p10 = pnand %p3172_p4, %p3166_p5 }
 0x195   : > { %3176 = shalt.err (!%p3173_p10)
}
 0x196   : > { %2591 = dma.hbm_to_vmem [thread:$0]  (!%p3567_p6), %s4322_s12, 512, %s635_s5, [#allocation22], %s4382_s20, %s4382_s20, %s4381_s30  }
 0x197   : > { %s3414_s21 = smov [#allocation26]   ;;  %s3415_s16 = smov [#allocation29]  }
 0x198   : > { %s660_s19 = sshll.u32 %s3414_s21, 4  ;;  %s686_s23 = sshll.u32 %s3415_s16, 4  ;;  %s661_s19 = int_to_ptr.vmem [resolvable:$true] %s660_s19  ;;  %s687_s23 = int_to_ptr.vmem [resolvable:$true] %s686_s23 }
 0x199   : > { %s4386_s28 = sld [smem:[#allocation59_spill]] }
 0x19f   : > { %s3177_s26 = scalar_lea.hbm %s4386_s28, 512 }
 0x1a0   : > { %p3178_p1 = scmp.ne.s32.totalorder %s4386_s28, %s3177_s26  ;;  %p3184_p12 = scmp.lt.u32.totalorder %s3177_s26, %s4386_s28 }
 0x1a2   : > { %p3180_p3 = pnand %p3178_p1, %p3583_p8 }
 0x1a4   : > { %p3181_p11 = pneg %p3180_p3 }
 0x1a6   : > { %p3186_p13 = pnand %p3184_p12, %p3181_p11 }
 0x1a8   : > { %3189 = shalt.err (!%p3186_p13)
}
 0x1a9   : > { %s3190_s5 = scalar_lea.vmem %s661_s19, 512  ;;  %p3198_p7 = scmp.lt.s32.totalorder %s661_s19, %s661_s19 }
 0x1aa   : > { %p3191_p0 = scmp.ne.s32.totalorder %s661_s19, %s3190_s5  ;;  %p3199_p9 = scmp.lt.s32.totalorder %s3190_s5, %s3190_s5 }
 0x1ac   : > { %p3193_p2 = pnand %p3191_p0, %p3583_p8  ;;  %p3200_p4 = por %p3199_p9, %p3198_p7 }
 0x1ae   : > { %p3194_p5 = pneg %p3193_p2 }
 0x1b0   : > { %p3201_p10 = pnand %p3200_p4, %p3194_p5 }
 0x1b2   : > { %3204 = shalt.err (!%p3201_p10)
}
 0x1b3   : > { %2597 = dma.hbm_to_vmem [thread:$0]  (!%p3567_p6), %s4386_s28, 512, %s661_s19, [#allocation25], %s4382_s20, %s4382_s20, %s4381_s30  }
 0x1b4   : > { %s4387_s3 = sld [smem:[#allocation60_spill]] }
 0x1ba   : > { %s3205_s14 = scalar_lea.hbm %s4387_s3, 512 }
 0x1bb   : > { %p3206_p1 = scmp.ne.s32.totalorder %s4387_s3, %s3205_s14  ;;  %p3212_p12 = scmp.lt.u32.totalorder %s3205_s14, %s4387_s3 }
 0x1bd   : > { %p3208_p3 = pnand %p3206_p1, %p3583_p8 }
 0x1bf   : > { %p3209_p11 = pneg %p3208_p3 }
 0x1c1   : > { %p3214_p13 = pnand %p3212_p12, %p3209_p11 }
 0x1c3   : > { %3217 = shalt.err (!%p3214_p13)
}
 0x1c4   : > { %s3218_s22 = scalar_lea.vmem %s687_s23, 512  ;;  %p3226_p7 = scmp.lt.s32.totalorder %s687_s23, %s687_s23 }
 0x1c5   : > { %p3219_p0 = scmp.ne.s32.totalorder %s687_s23, %s3218_s22  ;;  %p3227_p9 = scmp.lt.s32.totalorder %s3218_s22, %s3218_s22 }
 0x1c7   : > { %p3221_p2 = pnand %p3219_p0, %p3583_p8  ;;  %p3228_p4 = por %p3227_p9, %p3226_p7 }
 0x1c9   : > { %p3222_p5 = pneg %p3221_p2 }
 0x1cb   : > { %p3229_p10 = pnand %p3228_p4, %p3222_p5 }
 0x1cd   : > { %3232 = shalt.err (!%p3229_p10)
}
 0x1ce   : > { %2603 = dma.hbm_to_vmem [thread:$0]  (!%p3567_p6), %s4387_s3, 512, %s687_s23, [#allocation28], %s4382_s20, %s4382_s20, %s4381_s30  }
 0x1cf   : > { %s3416_s0 = smov [#allocation32]   ;;  %s4388_s14 = sld [smem:[#allocation61_spill]] }
 0x1d0   : > { %s712_s25 = sshll.u32 %s3416_s0, 4  ;;  %s713_s25 = int_to_ptr.vmem [resolvable:$true] %s712_s25 }
 0x1d5   : > { %s3233_s26 = scalar_lea.hbm %s4388_s14, 512 }
 0x1d6   : > { %p3234_p1 = scmp.ne.s32.totalorder %s4388_s14, %s3233_s26  ;;  %p3240_p12 = scmp.lt.u32.totalorder %s3233_s26, %s4388_s14 }
 0x1d8   : > { %p3236_p3 = pnand %p3234_p1, %p3583_p8 }
 0x1da   : > { %p3237_p11 = pneg %p3236_p3 }
 0x1dc   : > { %p3242_p13 = pnand %p3240_p12, %p3237_p11 }
 0x1de   : > { %3245 = shalt.err (!%p3242_p13)
}
 0x1df   : > { %s3246_s23 = scalar_lea.vmem %s713_s25, 512  ;;  %p3254_p7 = scmp.lt.s32.totalorder %s713_s25, %s713_s25 }
 0x1e0   : > { %p3247_p0 = scmp.ne.s32.totalorder %s713_s25, %s3246_s23  ;;  %p3255_p9 = scmp.lt.s32.totalorder %s3246_s23, %s3246_s23 }
 0x1e2   : > { %p3249_p2 = pnand %p3247_p0, %p3583_p8  ;;  %p3256_p4 = por %p3255_p9, %p3254_p7 }
 0x1e4   : > { %p3250_p5 = pneg %p3249_p2 }
 0x1e6   : > { %p3257_p10 = pnand %p3256_p4, %p3250_p5 }
 0x1e8   : > { %3260 = shalt.err (!%p3257_p10)
}
 0x1e9   : > { %s4389_s0 = sld [smem:[#allocation48_spill]]  ;;  %s4390_s21 = sld [smem:[#allocation47_spill]] }
 0x1ea   : > { %s4391_s2 = sld [smem:[#allocation46_spill]]  ;;  %s4392_s16 = sld [smem:[#allocation45_spill]] }
 0x1eb   : > { %s4393_s26 = sld [smem:[#allocation49_spill]] }
 0x1ec   : > { %2609 = dma.hbm_to_vmem [thread:$0]  (!%p3567_p6), %s4388_s14, 512, %s713_s25, [#allocation31], %s4382_s20, %s4382_s20, %s4381_s30  }
 0x1ed   : > { %s4399_s4 = sld [smem:[#allocation51_spill]] }
 0x1ef   : > { %s2261_s24 = sadd.s32 4294967294, %s4389_s0   ;;  %s3972_s1 = sadd.s32 1, %s4389_s0  }
 0x1f0   : > { %s48_s7 = ssub.s32 %s4389_s0, %s3972_s1  ;;  %s51_s29 = sadd.s32 1, %s4390_s21 }
 0x1f1   : > { %p49_p8 = scmp.eq.s32.totalorder %s48_s7, 0  ;;  %p58_p1 = scmp.ne.s32.totalorder %s4390_s21, %s4391_s2 }
 0x1f2   : > { %p59_p3 = scmp.eq.s32.totalorder %s4389_s0, 0  ;;  %p64_p11 = scmp.ne.s32.totalorder %s4391_s2, %s4392_s16 }
 0x1f3   : > { %s3983_s22 = scalar_select %p49_p8, %s4390_s21, %s51_s29  }
 0x1f4   : > { %p3985_p12 = por %p59_p3, %p58_p1  ;;  %p4395_p13 = scmp.eq.s32.totalorder %s4393_s26, 0 }
 0x1f5   : > { %p466_p0 = scmp.eq.s32.totalorder %s4393_s26, 1  ;;  %p472_p2 = scmp.eq.s32.totalorder %s2261_s24, 1 }
 0x1f6   : > { %p3991_p6 = por %p4395_p13, %p64_p11  ;;  %p2636_p5 = scmp.lt.s32.totalorder %s4389_s0, 2 }
 0x1f7   : > { %s726_s19 = sand.u32 1, %s4390_s21   ;;  %p3998_p7 = por %p466_p0, %p58_p1 }
 0x1f8   : > { %p4002_p9 = por %p472_p2, %p64_p11  ;;  %s2282_s16 = sshll.u32 %s726_s19, 5 }
 0x1f9   : > { %s4397_s5 = scalar_select %p3998_p7, 1, 0 }
 0x1fa   : > { %s4398_s2 = scalar_select %p4002_p9, 1, 0 }
 0x1fb   : > { %s2353_s7 = sshll.u32 %s4389_s0, 9  ;;  %s730_s21 = scalar_lea.vmem [#allocation3], %s2282_s16 }
 0x1fc   : > { %s4010_s6 = scalar_lea.hbm %s4399_s4, %s2353_s7  ;;  %s737_s26 = sshll.u32 %s730_s21, 4  ;;  %s4012_s26 = int_to_ptr.vmem [resolvable:$true] %s737_s26 }
 0x1fd   : > { %p4016_p4 = pnand %p2636_p5, %p3985_p12  ;;  %s4020_s0 = scalar_lea.sflag [#allocation4], %s726_s19 }
 0x1fe   : > { %s3261_s3 = scalar_lea.hbm %s4010_s6, 512  ;;  %s3266_s23 = scalar_lea.hbm %s4399_s4, 1024 }
 0x1ff   : > { %p3262_p10 = scmp.ne.s32.totalorder %s4010_s6, %s3261_s3  ;;  %p3263_p8 = pneg %p4016_p4 }
 0x200   : > { %p3267_p11 = scmp.lt.u32.totalorder %s4010_s6, %s4399_s4  ;;  %p3268_p12 = scmp.lt.u32.totalorder %s3266_s23, %s3261_s3 }
 0x201   : > { %p3264_p1 = pnand %p3263_p8, %p3262_p10  ;;  %p3270_p0 = scmp.lt.u32.totalorder %s3261_s3, %s4010_s6 }
 0x202   : > { %p3269_p13 = por %p3268_p12, %p3267_p11 }
 0x203   : > { %p3265_p3 = pneg %p3264_p1 }
 0x204   : > { %p3271_p2 = por %p3270_p0, %p3269_p13 }
 0x206   : > { %p3272_p5 = pnand %p3271_p2, %p3265_p3 }
 0x208   : > { %3275 = shalt.err (!%p3272_p5)
}
 0x209   : > { %s3276_s19 = scalar_lea.vmem %s4012_s26, 512  ;;  %s3417_s16 = smov [#allocation3]  }
 0x20a   : > { %p3277_p10 = scmp.ne.s32.totalorder %s4012_s26, %s3276_s19  ;;  %s3281_s7 = sshll.u32 %s3417_s16, 4  ;;  %s3282_s7 = int_to_ptr.vmem [resolvable:$false] %s3281_s7 }
 0x20b   : > { %s3283_s29 = scalar_lea.vmem %s3282_s7, 1024  ;;  %p3284_p7 = scmp.lt.s32.totalorder %s4012_s26, %s3282_s7 }
 0x20c   : > { %p3279_p1 = pnand %p3277_p10, %p3263_p8  ;;  %p3285_p11 = scmp.lt.s32.totalorder %s3283_s29, %s3276_s19 }
 0x20e   : > { %p3280_p9 = pneg %p3279_p1  ;;  %p3286_p12 = por %p3285_p11, %p3284_p7 }
 0x210   : > { %p3287_p13 = pnand %p3286_p12, %p3280_p9 }
 0x212   : > { %3290 = shalt.err (!%p3287_p13)
}
 0x213   : > { %2613 = dma.hbm_to_vmem [thread:$0]  (!%p4016_p4), %s4010_s6, 512, %s4012_s26, %s4020_s0, %s4382_s20, %s4382_s20, %s4381_s30  }
 0x214   : > { %s4401_s3 = sld [smem:[#allocation50_spill]] }
 0x21a   : > { %p4402_p8 = scmp.ne.s32.totalorder %s4401_s3, 0 }
 0x21b   : > { %s4403_s23 = sld [smem:[#allocation46_spill]] (!%p4402_p8) }
 0x21c   : > { %749 = sbr.rel (%p4402_p8) target bundleno = 3272 (0xcc8), region = 96 }
 0x221   : > { %s4054_s21 = sand.u32 (!%p4402_p8), 1, %s4403_s23  }
 0x222   : > { %s2286_s19 = sshll.u32 (!%p4402_p8), %s4054_s21, 5  ;;  %s752_s16 = scalar_lea.sflag (!%p4402_p8), [#allocation4], %s4054_s21 }
 0x223   : > { %s4060_s24 = scalar_lea.vmem [#allocation3], %s2286_s19 }
 0x224   : > { %3336 = dma.done.wait (%p3991_p6), %s752_s16, 512  }
 0x225   : > { %3338 = vsyncadd (%p3991_p6), %s752_s16, 4294966784  ;;  %s4404_s6 = sld [smem:[#allocation49_spill]] }
 0x22b   : > { %p4405_p7 = scmp.eq.s32.totalorder %s4404_s6, 0 }
 0x22d   : > { %3340 = dma.done.wait (%p4405_p7), [#allocation7], 768   ;;  %p4406_p9 = pmov %p4405_p7 }
 0x22e   : > { %p4407_p4 = pmov %p4405_p7 }
 0x22f   : > { %3342 = vsyncadd (%p4406_p9), [#allocation7], 4294966528 }
 0x230   : > { %3344 = dma.done.wait (%p4407_p4), [#allocation10], 1024   ;;  %p4408_p3 = pmov %p4407_p4 }
 0x232   : > { %3346 = vsyncadd (%p4408_p3), [#allocation10], 4294966272  ;;  %p4409_p0 = pmov %p4408_p3 }
 0x234   : > { %3348 = dma.done.wait (%p4409_p0), [#allocation13], 576   ;;  %p4410_p2 = pmov %p4409_p0 }
 0x235   : > { %p4411_p6 = pmov %p4409_p0 }
 0x236   : > { %3350 = vsyncadd (%p4410_p2), [#allocation13], 4294966720 }
 0x237   : > { %3352 = dma.done.wait (%p4411_p6), [#allocation16], 768   ;;  %p4412_p5 = pmov %p4409_p0 }
 0x238   : > { %p4413_p10 = pmov %p4409_p0 }
 0x239   : > { %3354 = vsyncadd (%p4412_p5), [#allocation16], 4294966528 }
 0x23a   : > { %3356 = dma.done.wait (%p4413_p10), [#allocation19], 768   ;;  %p4414_p1 = pmov %p4409_p0 }
 0x23b   : > { %p4415_p11 = pmov %p4409_p0 }
 0x23c   : > { %3358 = vsyncadd (%p4414_p1), [#allocation19], 4294966528 }
 0x23d   : > { %3360 = dma.done.wait (%p4415_p11), [#allocation22], 1024   ;;  %p4416_p12 = pmov %p4409_p0 }
 0x23e   : > { %p4417_p13 = pmov %p4409_p0 }
 0x23f   : > { %3362 = vsyncadd (%p4416_p12), [#allocation22], 4294966272 }
 0x240   : > { %3364 = dma.done.wait (%p4417_p13), [#allocation25], 768   ;;  %p4418_p8 = pmov %p4409_p0 }
 0x241   : > { %p4419_p7 = pmov %p4409_p0 }
 0x242   : > { %3366 = vsyncadd (%p4418_p8), [#allocation25], 4294966528 }
 0x243   : > { %3368 = dma.done.wait (%p4419_p7), [#allocation28], 1024   ;;  %p4420_p9 = pmov %p4409_p0 }
 0x244   : > { %p4421_p4 = pmov %p4409_p0 }
 0x245   : > { %3370 = vsyncadd (%p4420_p9), [#allocation28], 4294966272 }
 0x246   : > { %3372 = dma.done.wait (%p4421_p4), [#allocation31], 768   ;;  %p4422_p3 = pmov %p4409_p0 }
 0x247   : > { %vm1052_vm0 = vcmask 11264   ;;  %vm1054_vm1 = vcmask 27664   ;;  %v3418_v0 = vmov 0   ;;  %v4103_v1 = vld [vmem:[%s4060_s24] sm:$0xff]  ;;  %v4106_v2 = vld [vmem:[%s4060_s24 + $0x8] sm:$0xff]  ;;  %v4109_v3 = vld [vmem:[%s4060_s24 + $0x10] sm:$0xff]  ;;  %v887_v13 = vlaneseq }
 0x248   : > { %3374 = vsyncadd (%p4422_p3), [#allocation31], 4294966528  ;;  %2721 = vset.pattern.permute.xlu0 %v3418_v0  ;;  %1053 = vst.msk [vmem:[#allocation2] sm:$0xf] %vm1052_vm0, %v3418_v0  ;;  %2722 = vset.pattern.permute.xlu1 %v3418_v0  ;;  %v894_v4 = vpack.c.bf16 %v4106_v2, %v4103_v1  ;;  %v4114_v5 = vld [vmem:[%s4060_s24 + $0x18] sm:$0xff]  ;;  %vm930_vm2 = vcmask 261120  }
 0x249   : > { %1055 = vst.msk [vmem:[#allocation2 + $0x4] sm:$0xf] %vm1054_vm1, %v3418_v0  ;;  %v895_v6 = vpack.c.bf16 %v4114_v5, %v4109_v3  ;;  %v2723_v7 = vld [vmem:[#allocation6] sm:$0xff]   ;;  %v896_v8 = vld [vmem:[#allocation8] sm:$0xff]  ;;  %v2724_v11 = vld [vmem:[#allocation6 + $0x8] sm:$0xff]   ;;  %v4126_v19 = vand.u32 127, %v887_v13 }
 0x24a   : > { %2391 = vmatprep.subr.bf16.mxu0 %v894_v4  ;;  %2395 = vmatprep.mubr.msk.bf16.mxu0 %vm930_vm2, %v2723_v7  ;;  %v990_v9 = vld [vmem:[#allocation9] sm:$0xff]  ;;  %s3419_s30 = smov 2   ;;  %vm1066_vm4 = vcmask 1043472   ;;  %vm1067_vm5 = vcmask 15364   ;;  %vm1063_vm6 = vcmask 15360   ;;  %v3420_v30 = vmov 0.0  }
 0x24b   : > { %2392 = vmatpush3.bf16.msra.mxu0 %v894_v4  ;;  %v1018_v10 = vld [vmem:[#allocation11] sm:$0xff]  ;;  %902 = vperm.xlu0 %2721, %v896_v8   ;;  %vm889_vm3 = vcmp.lt.s32.totalorder %v4126_v19, 96  ;;  %vm4132_vm7 = vmor %vm1067_vm5, %vm1066_vm4  ;;  %vm3421_vm8 = vmmov 0   ;;  %s3422_s20 = smov 126   ;;  %s3423_s25 = smov 124   ;;  %v1095_v35 = vld [vmem:[#allocation14] sm:$0xff] }
 0x24c   : > { %2393 = vmatprep.subr.bf16.mxu0 %v895_v6  ;;  %1024 = vperm.xlu1 %2722, %v1018_v10   ;;  %v897_v36 = vld [vmem:[#allocation8 + $0x8] sm:$0xff]  ;;  %v1156_v39 = vld [vmem:[#allocation17] sm:$0xff]  ;;  %vm1081_vm9 = vcmask 1031168   ;;  %vm1089_vm10 = vcmask 1043456   ;;  %vm1087_vm11 = vcmask 1014784   ;;  %vm1101_vm12 = vcmask 195584  }
 0x24d   : > { %2399 = vmatprep.subr.bf16.mxu1 %v3420_v30  ;;  %2403 = vmatprep.mubr.msk.bf16.mxu1 %vm3421_vm8, %v3420_v30  ;;  %v1149_v37 = vld [vmem:[#allocation15] sm:$0xff]  ;;  %v1094_v50 = vld [vmem:[#allocation12] sm:$0xf]  ;;  %s3424_s26 = smov 120   ;;  %v899_v28 = vld [vmem:[#allocation8 + $0x18] sm:$0xff]  ;;  %s3425_s0 = smov 112  }
 0x24e   : > { %v991_v38 = vld [vmem:[#allocation9 + $0x8] sm:$0xff]  ;;  %s3426_s7 = smov 104   ;;  %vm1293_vm13 = vcmask 64512   ;;  %s881_s29 = scalar_lea.vmem [#allocation33], %s2286_s19 }
 0x24f   : > { %2394 = vmatpush3.bf16.msra.mxu0 %v895_v6  ;;  %996 = vperm.xlu0 %2721, %v990_v9   ;;  %v1019_v40 = vld [vmem:[#allocation11 + $0x8] sm:$0xff]  ;;  %s2017_s3 = sshll.u32 %s881_s29, 4  ;;  %s2357_s23 = sshll.u32 %s4404_s6, 9  ;;  %s4259_s3 = int_to_ptr.vmem [resolvable:$true] %s2017_s3 }
 0x250   : > { %2407 = vmatprep.subr.bf16.mxu0 %v3420_v30  ;;  %v2738_v19 = vld [vmem:[#allocation24 + $0x8] sm:$0xff]   ;;  %s4425_s24 = sld [smem:[#allocation62_spill]]  ;;  %p4426_p2 = scmp.ne.s32.totalorder %s4397_s5, 0 }
 0x251   : > { %s3427_s6 = smov [#allocation33]  }
 0x252   : > { %2396 = vmatmul.mubr.msk.bf16.vlgmr.msra.gmra.mrb[0].mxu0 %vm930_vm2, %v2724_v11 }
 0x253   : > { %2411 = vmatprep.mubr.msk.bf16.mxu0 %vm3421_vm8, %v3420_v30 }
 0x2ca   : > { %v903_v12 = vpop.permute.xlu0 %902 }
 0x2cb   : > { %v1025_v22 = vpop.permute.xlu1 %1024 }
 0x2ce   : > { %v997_v21 = vpop.permute.xlu0 %996 }
 0x325   : > { %v4120_v14 = vpop.f32.mrb[0].mxu0 }
 0x326   : > { %v971_v15 = vpop.f32.mrb[1].mxu0 }
 0x327   : > { %v972_v16 = vadd.f32 %v971_v15, %v903_v12  ;;  %v4122_v17 = vpop.f32.mrb[2].mxu0 }
 0x328   : > { %v4124_v18 = vpop.f32.mrb[3].mxu0 }
 0x329   : > { %v986_v20 = vmax.f32 %v972_v16, 0.0 }
 0x32b   : > { %v1014_v23 = vmul.f32 %v997_v21, %v986_v20 }
 0x32d   : > { %v1042_v24 = vadd.f32 %v1025_v22, %v1014_v23  ;;  %v1204_v22 = vld [vmem:[#allocation14 + $0x8] sm:$0xff] }
 0x32e   : > { %v898_v23 = vld [vmem:[#allocation8 + $0x10] sm:$0xff] }
 0x32f   : > { %v1048_v25 = vsel %vm889_vm3, %v1042_v24, 0.0  ;;  %v1258_v24 = vld [vmem:[#allocation15 + $0x8] sm:$0xff] }
 0x330   : > { %v2354_v26 = vpack.c.bf16 %v1048_v25, %v1048_v25  ;;  %v992_v25 = vld [vmem:[#allocation9 + $0x10] sm:$0xff] }
 0x332   : > { %1060 = vrot.lane.b32.xlu1 %v2354_v26, %s3419_s30  ;;  %v1266_v26 = vld [vmem:[#allocation17 + $0x8] sm:$0xff] }
 0x3a4   : > { %v1061_v27 = vpop.permute.xlu1 %1060 }
 0x3a5   : > { %v1062_v29 = vrot.slane %v1061_v27, 4 }
 0x3a7   : > { %v1064_v31 = vsel %vm1063_vm6, %v1062_v29, %v1061_v27  ;;  %v1020_v27 = vld [vmem:[#allocation11 + $0x10] sm:$0xff] }
 0x3a8   : > { %1069 = vst.msk [vmem:[#allocation2] sm:$0xff] %vm4132_vm7, %v1064_v31 }
 0x3af   : > { %v1071_v32 = vld [vmem:[#allocation2] sm:$0xff] }
 0x3b0   : > { %v2312_v33 = vcombine.high %v1071_v32, %v1071_v32  ;;  %v2311_v34 = vcombine.low %v1071_v32, %v1071_v32  ;;  %v1070_v44 = vld [vmem:[#allocation2] sm:$0xf] }
 0x3b2   : > { %1079 = vrot.lane.b32.xlu1 %v2312_v33, %s3422_s20  ;;  %1077 = vrot.lane.b32.xlu0 %v2311_v34, %s3422_s20 }
 0x3b6   : > { %1085 = vrot.lane.b32.xlu1 %v2312_v33, %s3423_s25  ;;  %1083 = vrot.lane.b32.xlu0 %v2311_v34, %s3423_s25 }
 0x3ba   : > { %1098 = vperm.xlu1 %2722, %v1095_v35   ;;  %907 = vperm.xlu0 %2721, %v897_v36  }
 0x3be   : > { %1152 = vperm.xlu1 %2722, %v1149_v37   ;;  %1001 = vperm.xlu0 %2721, %v991_v38  }
 0x3c2   : > { %1159 = vperm.xlu1 %2722, %v1156_v39   ;;  %1029 = vperm.xlu0 %2721, %v1019_v40   ;;  %v1202_v39 = vld [vmem:[#allocation12 + $0x4] sm:$0xf] }
 0x424   : > { %v1080_v41 = vpop.permute.xlu1 %1079  ;;  %v1078_v42 = vpop.permute.xlu0 %1077 }
 0x425   : > { %v1082_v43 = vsel %vm1081_vm9, %v1078_v42, %v1080_v41 }
 0x426   : > { %v1092_v45 = vsel %vm1089_vm10, %v1070_v44, %v1082_v43 }
 0x427   : > { %2400 = vmatpush3.bf16.msra.mxu1 %v1092_v45 }
 0x428   : > { %v1086_v46 = vpop.permute.xlu1 %1085  ;;  %v1084_v47 = vpop.permute.xlu0 %1083  ;;  %2401 = vmatprep.subr.bf16.mxu1 %v3420_v30 }
 0x429   : > { %v1088_v48 = vsel %vm1087_vm11, %v1084_v47, %v1086_v46 }
 0x42a   : > { %v1106_v49 = vsel %vm1089_vm10, %v1088_v48, 0 }
 0x42b   : > { %2402 = vmatpush3.bf16.msra.mxu1 %v1106_v49 }
 0x42e   : > { %2404 = vmatmul.mubr.msk.bf16.vlgmr.msra.gmra.mrb[0].mxu1 %vm1101_vm12, %v1094_v50 }
 0x439   : > { %v908_v51 = vpop.permute.xlu0 %907  ;;  %v1099_v52 = vpop.permute.xlu1 %1098 }
 0x43a   : > { %v975_v53 = vadd.f32 %v4124_v18, %v908_v51 }
 0x43c   : > { %v987_v55 = vmax.f32 %v975_v53, 0.0 }
 0x43d   : > { %v1002_v54 = vpop.permute.xlu0 %1001  ;;  %v1153_v56 = vpop.permute.xlu1 %1152 }
 0x43e   : > { %v1015_v62 = vmul.f32 %v1002_v54, %v987_v55 }
 0x441   : > { %v1030_v60 = vpop.permute.xlu0 %1029  ;;  %v1160_v7 = vpop.permute.xlu1 %1159 }
 0x442   : > { %v1043_v4 = vadd.f32 %v1030_v60, %v1015_v62 }
 0x444   : > { %v1049_v9 = vsel %vm889_vm3, %v1043_v4, 0.0 }
 0x501   : > { %v1142_v57 = vpop.f32.mrb[0].mxu1 }
 0x502   : > { %v1143_v58 = vadd.f32 %v1142_v57, %v1099_v52  ;;  %v2405_v59 = vpop.f32.mrb[1].mxu1 }
 0x503   : > { %v1145_v61 = vpop.f32.mrb[2].mxu1 }
 0x504   : > { %v1148_v63 = vmax.f32 %v1143_v58, 0.0  ;;  %v2406_v0 = vpop.f32.mrb[3].mxu1 }
 0x506   : > { %v1155_v6 = vmul.f32 %v1153_v56, %v1148_v63 }
 0x508   : > { %v1162_v8 = vadd.f32 %v1160_v7, %v1155_v6 }
 0x50a   : > { %v4160_v10 = vsel %vm889_vm3, %v1162_v8, 0.0 }
 0x50b   : > { %v1169_v11 = vadd.f32 %v4160_v10, %v1049_v9  ;;  %v4187_v61 = vpack.c.bf16 %v4160_v10, %v4160_v10  ;;  %v2731_v10 = vld [vmem:[#allocation18 + $0x8] sm:$0xff]  }
 0x50d   : > { %v2355_v12 = vpack.c.bf16 %v1169_v11, %v1169_v11  ;;  %v2732_v11 = vld [vmem:[#allocation18] sm:$0xff]  }
 0x50f   : > { %1174 = vrot.lane.b32.xlu0 %v2355_v12, %s3419_s30  ;;  %v1509_v12 = vld [vmem:[#allocation15 + $0x10] sm:$0xff] }
 0x581   : > { %v1175_v13 = vpop.permute.xlu0 %1174 }
 0x582   : > { %v1176_v15 = vrot.slane %v1175_v13, 4 }
 0x584   : > { %v1177_v16 = vsel %vm1063_vm6, %v1176_v15, %v1175_v13  ;;  %v1455_v13 = vld [vmem:[#allocation14 + $0x10] sm:$0xff]  ;;  %v1517_v15 = vld [vmem:[#allocation17 + $0x10] sm:$0xff] }
 0x585   : > { %1179 = vst.msk [vmem:[#allocation2] sm:$0xff] %vm4132_vm7, %v1177_v16  ;;  %v1021_v16 = vld [vmem:[#allocation11 + $0x18] sm:$0xff] }
 0x58c   : > { %v1181_v18 = vld [vmem:[#allocation2] sm:$0xff] }
 0x58d   : > { %v2316_v20 = vcombine.high %v1181_v18, %v1181_v18  ;;  %v2315_v21 = vcombine.low %v1181_v18, %v1181_v18  ;;  %v1180_v33 = vld [vmem:[#allocation2] sm:$0xf]  ;;  %v993_v18 = vld [vmem:[#allocation9 + $0x18] sm:$0xff] }
 0x58f   : > { %1189 = vrot.lane.b32.xlu0 %v2316_v20, %s3422_s20  ;;  %1187 = vrot.lane.b32.xlu1 %v2315_v21, %s3422_s20 }
 0x593   : > { %1194 = vrot.lane.b32.xlu0 %v2316_v20, %s3423_s25  ;;  %1192 = vrot.lane.b32.xlu1 %v2315_v21, %s3423_s25  ;;  %v2733_v20 = vld [vmem:[#allocation18 + $0x8] sm:$0xff]   ;;  %v2734_v21 = vld [vmem:[#allocation18] sm:$0xff]  }
 0x597   : > { %1207 = vperm.xlu0 %2721, %v1204_v22   ;;  %912 = vperm.xlu1 %2722, %v898_v23   ;;  %v1674_v22 = vld [vmem:[#allocation20 + $0x8] sm:$0xff]  ;;  %v1673_v23 = vld [vmem:[#allocation20] sm:$0xff] }
 0x59b   : > { %1261 = vperm.xlu0 %2721, %v1258_v24   ;;  %1006 = vperm.xlu1 %2722, %v992_v25   ;;  %v1676_v24 = vld [vmem:[#allocation20 + $0x18] sm:$0xff]  ;;  %v1675_v25 = vld [vmem:[#allocation20 + $0x10] sm:$0xff] }
 0x59f   : > { %1269 = vperm.xlu0 %2721, %v1266_v26   ;;  %1034 = vperm.xlu1 %2722, %v1020_v27   ;;  %v1706_v26 = vld [vmem:[#allocation21 + $0x8] sm:$0xff]  ;;  %v1705_v27 = vld [vmem:[#allocation21] sm:$0xff] }
 0x601   : > { %v1190_v29 = vpop.permute.xlu0 %1189  ;;  %v1188_v31 = vpop.permute.xlu1 %1187 }
 0x602   : > { %v1191_v32 = vsel %vm1081_vm9, %v1188_v31, %v1190_v29  ;;  %v1734_v29 = vld [vmem:[#allocation23 + $0x8] sm:$0xff]  ;;  %v1733_v31 = vld [vmem:[#allocation23] sm:$0xff] }
 0x603   : > { %v1199_v34 = vsel %vm1089_vm10, %v1180_v33, %v1191_v32  ;;  %v1708_v32 = vld [vmem:[#allocation21 + $0x18] sm:$0xff]  ;;  %v1707_v33 = vld [vmem:[#allocation21 + $0x10] sm:$0xff] }
 0x604   : > { %2408 = vmatpush3.bf16.msra.mxu0 %v1199_v34  ;;  %v1736_v34 = vld [vmem:[#allocation23 + $0x18] sm:$0xff] }
 0x605   : > { %v1195_v35 = vpop.permute.xlu0 %1194  ;;  %v1193_v36 = vpop.permute.xlu1 %1192  ;;  %2409 = vmatprep.subr.bf16.mxu0 %v3420_v30 }
 0x606   : > { %v1196_v37 = vsel %vm1087_vm11, %v1193_v36, %v1195_v35  ;;  %v1735_v35 = vld [vmem:[#allocation23 + $0x10] sm:$0xff] }
 0x607   : > { %v1214_v38 = vsel %vm1089_vm10, %v1196_v37, 0 }
 0x608   : > { %2410 = vmatpush3.bf16.msra.mxu0 %v1214_v38 }
 0x609   : > { %2427 = vmatprep.subr.bf16.mxu0 %v3420_v30 }
 0x60b   : > { %2412 = vmatmul.mubr.msk.bf16.vlgmr.msra.gmra.mrb[4].mxu0 %vm1101_vm12, %v1202_v39 }
 0x60c   : > { %2431 = vmatprep.mubr.msk.bf16.mxu0 %vm3421_vm8, %v3420_v30 }
 0x616   : > { %v913_v40 = vpop.permute.xlu1 %912  ;;  %v1208_v41 = vpop.permute.xlu0 %1207 }
 0x617   : > { %v980_v42 = vadd.f32 %v4120_v14, %v913_v40 }
 0x619   : > { %v988_v44 = vmax.f32 %v980_v42, 0.0 }
 0x61a   : > { %v1007_v43 = vpop.permute.xlu1 %1006  ;;  %v1262_v45 = vpop.permute.xlu0 %1261 }
 0x61b   : > { %v1016_v51 = vmul.f32 %v1007_v43, %v988_v44 }
 0x61e   : > { %v1035_v49 = vpop.permute.xlu1 %1034  ;;  %v1270_v56 = vpop.permute.xlu0 %1269 }
 0x61f   : > { %v1044_v54 = vadd.f32 %v1035_v49, %v1016_v51 }
 0x621   : > { %v1050_v58 = vsel %vm889_vm3, %v1044_v54, 0.0 }
 0x6de   : > { %v1250_v46 = vpop.f32.mrb[4].mxu0 }
 0x6df   : > { %v1251_v47 = vadd.f32 %v1250_v46, %v1208_v41  ;;  %v2413_v48 = vpop.f32.mrb[5].mxu0 }
 0x6e0   : > { %v1253_v50 = vpop.f32.mrb[6].mxu0  ;;  %v1369_v48 = vsel %vm1089_vm10, %v4187_v61, 0 }
 0x6e1   : > { %v1256_v52 = vmax.f32 %v1251_v47, 0.0  ;;  %v2414_v53 = vpop.f32.mrb[7].mxu0 }
 0x6e3   : > { %v1264_v55 = vmul.f32 %v1262_v45, %v1256_v52  ;;  %v1453_v45 = vld [vmem:[#allocation12 + $0x8] sm:$0xf] }
 0x6e5   : > { %v1272_v57 = vadd.f32 %v1270_v56, %v1264_v55  ;;  %v2735_v56 = vld [vmem:[#allocation18] sm:$0xff]  }
 0x6e7   : > { %v1273_v14 = vsel %vm889_vm3, %v1272_v57, 0.0  ;;  %v2736_v57 = vld [vmem:[#allocation18 + $0x8] sm:$0xff]  }
 0x6e8   : > { %v1278_v59 = vpack.c.bf16 %v1273_v14, %v1273_v14  ;;  %v1420_v60 = vadd.f32 %v1273_v14, %v1050_v58 }
 0x6ea   : > { %2475 = vmatprep.subr.msk.bf16.mxu1 %vm1089_vm10, %v1278_v59  ;;  %v1301_v62 = vsel %vm1089_vm10, %v1278_v59, 0  ;;  %v2356_v63 = vpack.c.bf16 %v1420_v60, %v1420_v60 }
 0x6eb   : > { %2416 = vmatpush3.bf16.msra.mxu1 %v1301_v62 }
 0x6ec   : > { %1425 = vrot.lane.b32.xlu1 %v2356_v63, %s3419_s30  ;;  %2476 = vmatprep.subr.msk.bf16.mxu1 %vm1089_vm10, %v4187_v61  ;;  %s4265_s30 = scalar_lea.hbm %s4425_s24, %s2357_s23 }
 0x75e   : > { %v1426_v0 = vpop.permute.xlu1 %1425 }
 0x75f   : > { %v1427_v4 = vrot.slane %v1426_v0, 4 }
 0x761   : > { %v1428_v6 = vsel %vm1063_vm6, %v1427_v4, %v1426_v0 }
 0x762   : > { %1430 = vst.msk [vmem:[#allocation2] sm:$0xff] %vm4132_vm7, %v1428_v6 }
 0x769   : > { %v1432_v7 = vld [vmem:[#allocation2] sm:$0xff] }
 0x76a   : > { %v2328_v8 = vcombine.high %v1432_v7, %v1432_v7  ;;  %v2327_v9 = vcombine.low %v1432_v7, %v1432_v7  ;;  %v1431_v39 = vld [vmem:[#allocation2] sm:$0xf] }
 0x76c   : > { %1440 = vrot.lane.b32.xlu1 %v2328_v8, %s3422_s20  ;;  %1438 = vrot.lane.b32.xlu0 %v2327_v9, %s3422_s20  ;;  %s2004_s20 = scalar_lea.sflag [#allocation5], %s4054_s21 }
 0x770   : > { %1445 = vrot.lane.b32.xlu1 %v2328_v8, %s3423_s25  ;;  %1443 = vrot.lane.b32.xlu0 %v2327_v9, %s3423_s25  ;;  %s3291_s25 = scalar_lea.vmem %s4259_s3, 512 }
 0x771   : > { %p3292_p0 = scmp.ne.s32.totalorder %s4259_s3, %s3291_s25 }
 0x773   : > { %p3293_p6 = pnand %p3292_p0, %p4426_p2 }
 0x774   : > { %1291 = vrot.lane.b32.xlu1 %v2731_v10, %s3424_s26  ;;  %1289 = vrot.lane.b32.xlu0 %v2732_v11, %s3424_s26  ;;  %s3295_s26 = sshll.u32 %s3427_s6, 4  ;;  %s3296_s26 = int_to_ptr.vmem [resolvable:$false] %s3295_s26 }
 0x775   : > { %p3294_p5 = pneg %p3293_p6  ;;  %p3298_p10 = scmp.lt.s32.totalorder %s4259_s3, %s3296_s26 }
 0x778   : > { %1512 = vperm.xlu1 %2722, %v1509_v12   ;;  %1458 = vperm.xlu0 %2721, %v1455_v13  }
 0x77c   : > { %917 = vperm.xlu1 %2722, %v899_v28   ;;  %1520 = vperm.xlu0 %2721, %v1517_v15  }
 0x780   : > { %1039 = vperm.xlu1 %2722, %v1021_v16   ;;  %1011 = vperm.xlu0 %2721, %v993_v18  }
 0x784   : > { %1542 = vrot.lane.b32.xlu1 %v2733_v20, %s3425_s0  ;;  %1540 = vrot.lane.b32.xlu0 %v2734_v21, %s3425_s0  ;;  %s3297_s0 = scalar_lea.vmem %s3296_s26, 1024 }
 0x785   : > { %p3299_p1 = scmp.lt.s32.totalorder %s3297_s0, %s3291_s25 }
 0x787   : > { %p3300_p11 = por %p3299_p1, %p3298_p10 }
 0x788   : > { %1609 = vrot.lane.b32.xlu1 %v2733_v20, %s3426_s7  ;;  %1607 = vrot.lane.b32.xlu0 %v2734_v21, %s3426_s7 }
 0x789   : > { %p3301_p12 = pnand %p3300_p11, %p3294_p5 }
 0x78c   : > { %1684 = vperm.xlu1 %2722, %v1674_v22   ;;  %1679 = vperm.xlu0 %2721, %v1673_v23  }
 0x790   : > { %1694 = vperm.xlu1 %2722, %v1676_v24   ;;  %1689 = vperm.xlu0 %2721, %v1675_v25  }
 0x794   : > { %1716 = vperm.xlu1 %2722, %v1706_v26   ;;  %1711 = vperm.xlu0 %2721, %v1705_v27  }
 0x798   : > { %1744 = vperm.xlu1 %2722, %v1734_v29   ;;  %1739 = vperm.xlu0 %2721, %v1733_v31  }
 0x79c   : > { %1726 = vperm.xlu1 %2722, %v1708_v32   ;;  %1721 = vperm.xlu0 %2721, %v1707_v33  }
 0x7a0   : > { %1754 = vperm.xlu1 %2722, %v1736_v34   ;;  %1749 = vperm.xlu0 %2721, %v1735_v35  }
 0x7de   : > { %v1441_v36 = vpop.permute.xlu1 %1440  ;;  %v1439_v37 = vpop.permute.xlu0 %1438 }
 0x7df   : > { %v1442_v38 = vsel %vm1081_vm9, %v1439_v37, %v1441_v36 }
 0x7e0   : > { %v1450_v40 = vsel %vm1089_vm10, %v1431_v39, %v1442_v38 }
 0x7e1   : > { %2428 = vmatpush3.bf16.msra.mxu0 %v1450_v40 }
 0x7e2   : > { %v1446_v41 = vpop.permute.xlu1 %1445  ;;  %v1444_v42 = vpop.permute.xlu0 %1443  ;;  %2429 = vmatprep.subr.bf16.mxu0 %v3420_v30 }
 0x7e3   : > { %v1447_v43 = vsel %vm1087_vm11, %v1444_v42, %v1446_v41 }
 0x7e4   : > { %v1465_v44 = vsel %vm1089_vm10, %v1447_v43, 0 }
 0x7e5   : > { %2430 = vmatpush3.bf16.msra.mxu0 %v1465_v44 }
 0x7e6   : > { %v1290_v46 = vpop.permute.xlu0 %1289  ;;  %v1292_v47 = vpop.permute.xlu1 %1291 }
 0x7e7   : > { %2417 = vmatprep.mubr.msk.bf16.mxu1 %vm1293_vm13, %v1290_v46 }
 0x7e8   : > { %2418 = vmatmul.mubr.msk.bf16.vlgmr.msra.gmra.mrb[4].mxu1 %vm1293_vm13, %v1292_v47  ;;  %2432 = vmatmul.mubr.msk.bf16.vlgmr.msra.gmra.mrb[8].mxu0 %vm1101_vm12, %v1453_v45 }
 0x7e9   : > { %2422 = vmatpush3.bf16.msra.mxu1 %v1369_v48  ;;  %2423 = vmatprep.mubr.msk.bf16.mxu1 %vm1293_vm13, %v2735_v56 }
 0x7f4   : > { %2424 = vmatmul.mubr.msk.bf16.vlgmr.msra.gmra.mrb[4].mxu1 %vm1293_vm13, %v2736_v57 }
 0x7f7   : > { %v1513_v30 = vpop.permute.xlu1 %1512  ;;  %v1459_v49 = vpop.permute.xlu0 %1458 }
 0x7fb   : > { %v918_v50 = vpop.permute.xlu1 %917  ;;  %v1521_v51 = vpop.permute.xlu0 %1520 }
 0x7fc   : > { %v983_v52 = vadd.f32 %v4122_v17, %v918_v50 }
 0x7fe   : > { %v989_v53 = vmax.f32 %v983_v52, 0.0 }
 0x7ff   : > { %v1012_v54 = vpop.permute.xlu0 %1011  ;;  %v1040_v0 = vpop.permute.xlu1 %1039 }
 0x800   : > { %v1017_v55 = vmul.f32 %v1012_v54, %v989_v53 }
 0x802   : > { %v1045_v17 = vadd.f32 %v1040_v0, %v1017_v55  ;;  %v2737_v55 = vld [vmem:[#allocation24] sm:$0xff]  }
 0x803   : > { %v1541_v58 = vpop.permute.xlu0 %1540  ;;  %v1543_v12 = vpop.permute.xlu1 %1542  ;;  %2451 = vmatprep.mubr.msk.bf16.mxu0 %vm930_vm2, %v2737_v55 }
 0x804   : > { %2437 = vmatprep.mubr.msk.bf16.mxu1 %vm1293_vm13, %v1541_v58  ;;  %v1051_v7 = vsel %vm889_vm3, %v1045_v17, 0.0  ;;  %v2739_v17 = vld [vmem:[#allocation30] sm:$0xff]  }
 0x805   : > { %v1606_v10 = vpack.c.bf16 %v1051_v7, %v1051_v7 }
 0x807   : > { %v1608_v13 = vpop.permute.xlu0 %1607  ;;  %v1618_v28 = vsel %vm1089_vm10, %v1606_v10, 0  ;;  %v1610_v15 = vpop.permute.xlu1 %1609 }
 0x80b   : > { %v1680_v16 = vpop.permute.xlu0 %1679  ;;  %v1685_v18 = vpop.permute.xlu1 %1684 }
 0x80f   : > { %v1690_v20 = vpop.permute.xlu0 %1689  ;;  %v1695_v21 = vpop.permute.xlu1 %1694 }
 0x813   : > { %v1712_v22 = vpop.permute.xlu0 %1711  ;;  %v1717_v23 = vpop.permute.xlu1 %1716 }
 0x817   : > { %v1740_v24 = vpop.permute.xlu0 %1739  ;;  %v1745_v26 = vpop.permute.xlu1 %1744 }
 0x81b   : > { %v1722_v33 = vpop.permute.xlu0 %1721  ;;  %v1727_v43 = vpop.permute.xlu1 %1726 }
 0x81f   : > { %v1750_v46 = vpop.permute.xlu0 %1749 }
 0x8bb   : > { %v1501_v14 = vpop.f32.mrb[8].mxu0 }
 0x8bc   : > { %v1502_v59 = vadd.f32 %v1501_v14, %v1459_v49  ;;  %v2433_v60 = vpop.f32.mrb[9].mxu0 }
 0x8bd   : > { %v1504_v61 = vpop.f32.mrb[10].mxu0 }
 0x8be   : > { %v1507_v62 = vmax.f32 %v1502_v59, 0.0  ;;  %v2434_v63 = vpop.f32.mrb[11].mxu0 }
 0x8c0   : > { %v1515_v4 = vmul.f32 %v1513_v30, %v1507_v62 }
 0x8c2   : > { %v1523_v6 = vadd.f32 %v1521_v51, %v1515_v4  ;;  %v1755_v51 = vpop.permute.xlu1 %1754  ;;  %v1785_v4 = vld [vmem:[#allocation26 + $0x10] sm:$0xff] }
 0x8c4   : > { %v1524_v8 = vsel %vm889_vm3, %v1523_v6, 0.0  ;;  %v1783_v6 = vld [vmem:[#allocation26] sm:$0xff] }
 0x8c5   : > { %v1529_v9 = vpack.c.bf16 %v1524_v8, %v1524_v8  ;;  %v1786_v8 = vld [vmem:[#allocation26 + $0x18] sm:$0xff] }
 0x8c7   : > { %2477 = vmatprep.subr.msk.bf16.mxu1 %vm1089_vm10, %v1529_v9  ;;  %v1551_v11 = vsel %vm1089_vm10, %v1529_v9, 0 }
 0x8c8   : > { %2436 = vmatpush3.bf16.msra.mxu1 %v1551_v11  ;;  %v1784_v11 = vld [vmem:[#allocation26 + $0x8] sm:$0xff] }
 0x8c9   : > { %2478 = vmatprep.subr.msk.bf16.mxu1 %vm1089_vm10, %v1606_v10 }
 0x8cb   : > { %2438 = vmatmul.mubr.msk.bf16.vlgmr.msra.gmra.mrb[4].mxu1 %vm1293_vm13, %v1543_v12  ;;  %v1858_v12 = vld [vmem:[#allocation27 + $0x10] sm:$0xff] }
 0x8cc   : > { %2442 = vmatpush3.bf16.msra.mxu1 %v1618_v28  ;;  %2443 = vmatprep.mubr.msk.bf16.mxu1 %vm1293_vm13, %v1608_v13 }
 0x8d7   : > { %2444 = vmatmul.mubr.msk.bf16.vlgmr.msra.gmra.mrb[4].mxu1 %vm1293_vm13, %v1610_v15 }
 0x9aa   : > { %v2445_v25 = vpop.f32.mrb[4].mxu1 }
 0x9ab   : > { %v1699_v27 = vadd.f32 %v2445_v25, %v1690_v20  ;;  %v1654_v29 = vpop.f32.mrb[5].mxu1 }
 0x9ac   : > { %v1697_v31 = vadd.f32 %v1680_v16, %v1654_v29  ;;  %v2446_v32 = vpop.f32.mrb[6].mxu1  ;;  %v1856_v16 = vld [vmem:[#allocation27] sm:$0xff] }
 0x9ad   : > { %v1703_v34 = vmax.f32 %v1699_v27, 0.0  ;;  %v1700_v35 = vadd.f32 %v2446_v32, %v1695_v21  ;;  %v1657_v36 = vpop.f32.mrb[7].mxu1  ;;  %v1866_v27 = vld [vmem:[#allocation29 + $0x10] sm:$0xff] }
 0x9ae   : > { %v1701_v37 = vmax.f32 %v1697_v31, 0.0  ;;  %v1698_v38 = vadd.f32 %v1685_v18, %v1657_v36  ;;  %v1867_v31 = vld [vmem:[#allocation29 + $0x18] sm:$0xff] }
 0x9af   : > { %v1731_v39 = vmul.f32 %v1722_v33, %v1703_v34  ;;  %v1704_v41 = vmax.f32 %v1700_v35, 0.0  ;;  %v1864_v33 = vld [vmem:[#allocation29] sm:$0xff]  ;;  %v1865_v35 = vld [vmem:[#allocation29 + $0x8] sm:$0xff] }
 0x9b0   : > { %v1729_v40 = vmul.f32 %v1712_v22, %v1701_v37  ;;  %v1702_v42 = vmax.f32 %v1698_v38, 0.0  ;;  %v1859_v22 = vld [vmem:[#allocation27 + $0x18] sm:$0xff] }
 0x9b1   : > { %v1732_v47 = vmul.f32 %v1727_v43, %v1704_v41  ;;  %v1759_v49 = vadd.f32 %v1750_v46, %v1731_v39  ;;  %v2740_v43 = vld [vmem:[#allocation30 + $0x8] sm:$0xff]  }
 0x9b2   : > { %v1730_v44 = vmul.f32 %v1717_v23, %v1702_v42  ;;  %v1757_v45 = vadd.f32 %v1740_v24, %v1729_v40 }
 0x9b3   : > { %v4238_v52 = vsel %vm889_vm3, %v1759_v49, 0.0  ;;  %v1760_v53 = vadd.f32 %v1755_v51, %v1732_v47  ;;  %v1881_v47 = vld [vmem:[#allocation32 + $0x18] sm:$0xff]  ;;  %v1879_v51 = vld [vmem:[#allocation32 + $0x8] sm:$0xff] }
 0x9b4   : > { %v4228_v48 = vsel %vm889_vm3, %v1757_v45, 0.0  ;;  %v1758_v30 = vadd.f32 %v1745_v26, %v1730_v44  ;;  %v1857_v26 = vld [vmem:[#allocation27 + $0x8] sm:$0xff]  ;;  %v1880_v44 = vld [vmem:[#allocation32 + $0x10] sm:$0xff]  ;;  %v1878_v45 = vld [vmem:[#allocation32] sm:$0xff] }
 0x9b5   : > { %1765 = vadd.xlane.f32.xlu0 %v4228_v48  ;;  %v4243_v54 = vsel %vm889_vm3, %v1760_v53, 0.0 }
 0x9b6   : > { %v4233_v50 = vsel %vm889_vm3, %v1758_v30, 0.0 }
 0x9b7   : > { %1767 = vadd.xlane.f32.xlu1 %v4233_v50 }
 0x9b9   : > { %1769 = vadd.xlane.f32.xlu0 %v4238_v52 }
 0x9bd   : > { %1771 = vadd.xlane.f32.xlu0 %v4243_v54 }
 0xa42   : > { %v1766_v56 = vpop.xlane.xlu0 %1765 }
 0xa43   : > { %v1773_v58 = vmul.f32 0.010416667, %v1766_v56 }
 0xa44   : > { %v1768_v57 = vpop.xlane.xlu1 %1767 }
 0xa45   : > { %v1774_v14 = vmul.f32 0.010416667, %v1768_v57 }
 0xa46   : > { %v1770_v59 = vpop.xlane.xlu0 %1769 }
 0xa47   : > { %v1781_v60 = vpack.c.bf16 %v1774_v14, %v1773_v58  ;;  %v1775_v62 = vmul.f32 0.010416667, %v1770_v59 }
 0xa49   : > { %2447 = vmatprep.subr.bf16.mxu0 %v1781_v60 }
 0xa4a   : > { %v1772_v61 = vpop.xlane.xlu0 %1771  ;;  %2448 = vmatpush3.bf16.msra.mxu0 %v1781_v60 }
 0xa4b   : > { %v1776_v63 = vmul.f32 0.010416667, %v1772_v61 }
 0xa4d   : > { %v1782_v0 = vpack.c.bf16 %v1776_v63, %v1775_v62 }
 0xa4f   : > { %2449 = vmatprep.subr.bf16.mxu0 %v1782_v0 }
 0xa50   : > { %2450 = vmatpush3.bf16.msra.mxu0 %v1782_v0 }
 0xa53   : > { %2452 = vmatmul.mubr.msk.bf16.vlgmr.msra.gmra.mrb[12].mxu0 %vm930_vm2, %v2738_v19 }
 0xa54   : > { %2459 = vmatprep.mubr.msk.bf16.mxu0 %vm930_vm2, %v2739_v17 }
 0xb26   : > { %v2453_v7 = vpop.f32.mrb[12].mxu0 }
 0xb27   : > { %v1846_v9 = vadd.f32 %v2453_v7, %v1785_v4  ;;  %v1837_v10 = vpop.f32.mrb[13].mxu0 }
 0xb28   : > { %v1838_v13 = vadd.f32 %v1837_v10, %v1783_v6  ;;  %v2454_v28 = vpop.f32.mrb[14].mxu0 }
 0xb29   : > { %v1854_v15 = vmax.f32 %v1846_v9, 0.0  ;;  %v1849_v18 = vadd.f32 %v2454_v28, %v1786_v8  ;;  %v1840_v20 = vpop.f32.mrb[15].mxu0 }
 0xb2a   : > { %v1852_v21 = vmax.f32 %v1838_v13, 0.0  ;;  %v1841_v23 = vadd.f32 %v1840_v20, %v1784_v11 }
 0xb2b   : > { %v1862_v24 = vmul.f32 %v1858_v12, %v1854_v15  ;;  %v1855_v25 = vmax.f32 %v1849_v18, 0.0 }
 0xb2c   : > { %v1860_v29 = vmul.f32 %v1856_v16, %v1852_v21  ;;  %v1853_v32 = vmax.f32 %v1841_v23, 0.0 }
 0xb2d   : > { %v1863_v34 = vmul.f32 %v1859_v22, %v1855_v25  ;;  %v1870_v37 = vadd.f32 %v1866_v27, %v1862_v24 }
 0xb2e   : > { %v1861_v36 = vmul.f32 %v1857_v26, %v1853_v32  ;;  %v1868_v39 = vadd.f32 %v1864_v33, %v1860_v29 }
 0xb2f   : > { %v1871_v38 = vadd.f32 %v1867_v31, %v1863_v34 }
 0xb30   : > { %v1869_v40 = vadd.f32 %v1865_v35, %v1861_v36 }
 0xb31   : > { %v1877_v41 = vpack.c.bf16 %v1871_v38, %v1870_v37 }
 0xb32   : > { %v1876_v42 = vpack.c.bf16 %v1869_v40, %v1868_v39 }
 0xb34   : > { %2455 = vmatprep.subr.bf16.mxu0 %v1876_v42 }
 0xb35   : > { %2456 = vmatpush3.bf16.msra.mxu0 %v1876_v42 }
 0xb36   : > { %2457 = vmatprep.subr.bf16.mxu0 %v1877_v41 }
 0xb39   : > { %2458 = vmatpush3.bf16.msra.mxu0 %v1877_v41 }
 0xb3c   : > { %2460 = vmatmul.mubr.msk.bf16.vlgmr.msra.gmra.mrb[16].mxu0 %vm930_vm2, %v2740_v43 }
 0xc0f   : > { %v2461_v46 = vpop.f32.mrb[16].mxu0 }
 0xc10   : > { %v1941_v30 = vadd.f32 %v2461_v46, %v1880_v44  ;;  %v1932_v49 = vpop.f32.mrb[17].mxu0 }
 0xc11   : > { %v1933_v53 = vadd.f32 %v1932_v49, %v1878_v45  ;;  %v2462_v55 = vpop.f32.mrb[18].mxu0 }
 0xc12   : > { %v2346_v56 = vmul.f32 -1.442695, %v1941_v30  ;;  %v1944_v57 = vadd.f32 %v2462_v55, %v1881_v47  ;;  %v1935_v58 = vpop.f32.mrb[19].mxu0 }
 0xc13   : > { %v2344_v14 = vmul.f32 -1.442695, %v1933_v53  ;;  %v1936_v59 = vadd.f32 %v1935_v58, %v1879_v51 }
 0xc14   : > { %2741 = vpow2.f32 %v2346_v56  ;;  %v2347_v60 = vmul.f32 -1.442695, %v1944_v57 }
 0xc15   : > { %2743 = vpow2.f32 %v2344_v14  ;;  %v2345_v61 = vmul.f32 -1.442695, %v1936_v59 }
 0xc17   : > { %2745 = vpow2.f32 %v2345_v61 }
 0xc18   : > { %2747 = vpow2.f32 %v2347_v60 }
 0xc1e   : > { %v2742_v62 = vpop.eup %2741 }
 0xc1f   : > { %v2744_v63 = vpop.eup %2743  ;;  %v1961_v17 = vadd.f32 1.0, %v2742_v62 }
 0xc20   : > { %v1959_v0 = vadd.f32 1.0, %v2744_v63 }
 0xc21   : > { %v2746_v19 = vpop.eup %2745 }
 0xc22   : > { %2749 = vrcp.f32 %v1959_v0  ;;  %v1960_v4 = vadd.f32 1.0, %v2746_v19  ;;  %v2748_v6 = vpop.eup %2747 }
 0xc23   : > { %v1962_v7 = vadd.f32 1.0, %v2748_v6 }
 0xc24   : > { %2751 = vrcp.f32 %v1960_v4 }
 0xc25   : > { %2753 = vrcp.f32 %v1961_v17 }
 0xc26   : > { %2755 = vrcp.f32 %v1962_v7 }
 0xc2c   : > { %v2750_v8 = vpop.eup %2749 }
 0xc2d   : > { %1973 = vperm.xlu1 %2722, %v2750_v8  }
 0xc2e   : > { %v2752_v9 = vpop.eup %2751 }
 0xc2f   : > { %1978 = vperm.xlu0 %2721, %v2752_v9   ;;  %v2754_v10 = vpop.eup %2753 }
 0xc30   : > { %v2756_v11 = vpop.eup %2755 }
 0xc31   : > { %1983 = vperm.xlu1 %2722, %v2754_v10  }
 0xc35   : > { %1988 = vperm.xlu1 %2722, %v2756_v11  }
 0xcac   : > { %v1974_v12 = vpop.permute.xlu1 %1973 }
 0xcad   : > { %v1991_v13 = vmul.f32 %v1974_v12, %v4228_v48 }
 0xcae   : > { %v1979_v28 = vpop.permute.xlu0 %1978 }
 0xcaf   : > { %v1995_v15 = vadd.f32 %v1991_v13, %v4103_v1  ;;  %v1992_v16 = vmul.f32 %v1979_v28, %v4233_v50 }
 0xcb0   : > { %v1984_v18 = vpop.permute.xlu1 %1983 }
 0xcb1   : > { %1999 = vst [vmem:[%s881_s29] sm:$0xff] %v1995_v15  ;;  %v1996_v20 = vadd.f32 %v1992_v16, %v4106_v2  ;;  %v1993_v21 = vmul.f32 %v1984_v18, %v4238_v52 }
 0xcb3   : > { %2000 = vst [vmem:[%s881_s29 + $0x8] sm:$0xff] %v1996_v20  ;;  %v1997_v22 = vadd.f32 %v1993_v21, %v4109_v3 }
 0xcb4   : > { %v1989_v48 = vpop.permute.xlu1 %1988 }
 0xcb5   : > { %2001 = vst [vmem:[%s881_s29 + $0x10] sm:$0xff] %v1997_v22  ;;  %v1994_v1 = vmul.f32 %v1989_v48, %v4243_v54 }
 0xcb7   : > { %v1998_v2 = vadd.f32 %v1994_v1, %v4114_v5 }
 0xcb9   : > { %2002 = vst [vmem:[%s881_s29 + $0x18] sm:$0xff] %v1998_v2 }
 0xcba   : > { %3304 = shalt.err (!%p3301_p12)
}
 0xcbb   : > { %s3305_s7 = scalar_lea.hbm %s4265_s30, 512  ;;  %s3309_s19 = scalar_lea.hbm %s4425_s24, 1024 }
 0xcbc   : > { %p3306_p13 = scmp.ne.s32.totalorder %s4265_s30, %s3305_s7  ;;  %p3310_p9 = scmp.lt.u32.totalorder %s4265_s30, %s4425_s24 }
 0xcbd   : > { %p3311_p4 = scmp.lt.u32.totalorder %s3309_s19, %s3305_s7  ;;  %p3313_p0 = scmp.lt.u32.totalorder %s3305_s7, %s4265_s30 }
 0xcbe   : > { %p3307_p8 = pnand %p3306_p13, %p4426_p2 }
 0xcbf   : > { %p3312_p3 = por %p3311_p4, %p3310_p9 }
 0xcc0   : > { %p3308_p7 = pneg %p3307_p8 }
 0xcc1   : > { %p3314_p6 = por %p3313_p0, %p3312_p3 }
 0xcc3   : > { %p3315_p5 = pnand %p3314_p6, %p3308_p7 }
 0xcc5   : > { %3318 = shalt.err (!%p3315_p5)
}
 0xcc6   : > { %s3428_s25 = smov 128   ;;  %s3429_s26 = smov 8  }
 0xcc7   : > { %2553 = dma.vmem_to_hbm [thread:$0]  (%p4426_p2), %s4259_s3, 512, %s4265_s30, %s2004_s20, %s3428_s25, %s3428_s25, %s3429_s26  }
 0xcc8 PF: > { %s4427_s0 = sld [smem:[#allocation45_spill]]  ;;  %s4428_s29 = sld [smem:[#allocation48_spill]] }
 0xcc9   : > { %p4429_p10 = scmp.ne.s32.totalorder %s4398_s2, 0 }
 0xcce   : > { %s2032_s23 = sand.u32 1, %s4427_s0   ;;  %p4430_p1 = scmp.ge.s32.totalorder %s4428_s29, 2 }
 0xccf   : > { %s2033_s7 = scalar_lea.sflag [#allocation5], %s2032_s23 }
 0xcd0   : > { %p2615_p11 = pnand %p4430_p1, %p4429_p10 }
 0xcd2   : > { %3376 = dma.done.wait (!%p2615_p11), %s2033_s7, 512  }
 0xcd3   : > { %3378 = vsyncadd (!%p2615_p11), %s2033_s7, 4294966784  ;;  %s4431_s0 = sld [smem:[#allocation46_spill]]  ;;  %s4432_s30 = sld [smem:[#allocation47_spill]] }
 0xcd4   : > { %p41_p12 = scmp.ge.s32.totalorder %s3972_s1, 4   ;;  %s4433_s20 = smov %s3983_s22 }
 0xcd5   : > { %s4434_s21 = smov %s3972_s1 }
 0xcd6   :  { %43 = sbr.rel (!%p41_p12) target bundleno = 27 (0x1b), region = 221 }
 0xcdd   :  { %2038 = vsyncpa [#allocation4], 1 }
 0xcde   :  { %2040 = vsyncpa [#allocation4 + $0x1], 1 }
 0xcdf   :  { %2041 = vsyncpa [#allocation7], 1 }
 0xce0   :  { %2042 = vsyncpa [#allocation10], 1 }
 0xce1   :  { %2043 = vsyncpa [#allocation13], 1 }
 0xce2   :  { %2044 = vsyncpa [#allocation16], 1 }
 0xce3   :  { %2045 = vsyncpa [#allocation19], 1 }
 0xce4   :  { %2046 = vsyncpa [#allocation22], 1 }
 0xce5   :  { %2047 = vsyncpa [#allocation25], 1 }
 0xce6   :  { %2048 = vsyncpa [#allocation28], 1 }
 0xce7   :  { %2049 = vsyncpa [#allocation31], 1 }
 0xce8   :  { %2050 = vsyncpa [#allocation5], 1 }
 0xce9   :  { %2052 = vsyncpa [#allocation5 + $0x1], 1 }

</bundles_post_ra>
